<compile_context>
chip_gen: v5e
topology: v5e:2x2
jax: 0.10.0
libtpu: 0.0.40
codegen_flags: <defaults>
</compile_context>

<pallas_src>
import functools

import jax
import jax.numpy as jnp
from jax.experimental import pallas as pl
from jax.experimental.pallas import tpu as pltpu

INPUT_DIM = 10
LATENT_DIM = 128
H1, H2 = 512, 256
LANE = 128


def _round_up(n, m):
    return ((n + m - 1) // m) * m


def _ae_kernel(x_ref,
               w1_ref, b1_ref, w2_ref, b2_ref, w3_ref, b3_ref,
               w4_ref, b4_ref, w5_ref, b5_ref, w6_ref, b6_ref,
               z_ref, xr_ref):
    """Fused encoder/decoder MLP: 6 matmuls + biases + ReLUs, f32 accumulation."""
    wdt = w1_ref.dtype                       # bf16 or f32 compute dtype
    h = x_ref[...].astype(wdt)

    # ---- encoder ----
    h = jnp.dot(h, w1_ref[...], preferred_element_type=jnp.float32) + b1_ref[...]
    h = jnp.maximum(h, 0.0).astype(wdt)
    h = jnp.dot(h, w2_ref[...], preferred_element_type=jnp.float32) + b2_ref[...]
    h = jnp.maximum(h, 0.0).astype(wdt)
    h = jnp.dot(h, w3_ref[...], preferred_element_type=jnp.float32) + b3_ref[...]
    z = jnp.maximum(h, 0.0)                  # f32
    z_ref[...] = z.astype(z_ref.dtype)

    # ---- decoder ----
    d = jnp.dot(z.astype(wdt), w4_ref[...], preferred_element_type=jnp.float32) + b4_ref[...]
    d = jnp.maximum(d, 0.0).astype(wdt)
    d = jnp.dot(d, w5_ref[...], preferred_element_type=jnp.float32) + b5_ref[...]
    d = jnp.maximum(d, 0.0).astype(wdt)
    d = jnp.dot(d, w6_ref[...], preferred_element_type=jnp.float32) + b6_ref[...]
    xr_ref[...] = d.astype(xr_ref.dtype)


def _const_spec(shape):
    # Whole-array block, same tile every grid step -> DMA'd once; single-buffer
    # it so the 12 replicated weight/bias operands don't reserve 2x VMEM.
    return pl.BlockSpec(shape, lambda i: (0, 0),
                        pipeline_mode=pl.Buffered(buffer_count=1))


@functools.partial(jax.jit, static_argnames=("block_b", "param_dtype"))
def ae_encoder_forward(x, params, block_b=256, param_dtype=jnp.bfloat16):
    """Runs AE_Encoder.forward. Returns (z, x_recon) in float32."""
    (w1, b1, w2, b2, w3, b3, w4, b4, w5, b5, w6, b6) = params
    B, in_dim = x.shape
    latent = w3.shape[1]
    assert block_b % 8 == 0

    # Lane-pad the 10-wide reconstruction layer to 128 -> dense (unmasked) stores.
    out_pad = _round_up(in_dim, LANE)
    w6p = jnp.zeros((w6.shape[0], out_pad), w6.dtype).at[:, :in_dim].set(w6)
    b6p = jnp.zeros((1, out_pad), b6.dtype).at[:, :in_dim].set(b6)

    # bf16 weights/activations feed the MXU at its native rate on v6e/v7x;
    # accumulation stays f32 inside the kernel. Biases stay f32.
    xc = x.astype(param_dtype)
    w1c, w2c, w3c = (w.astype(param_dtype) for w in (w1, w2, w3))
    w4c, w5c, w6c = (w.astype(param_dtype) for w in (w4, w5, w6p))

    # Batch tiling: pad rows to a multiple of 8 (sublane) and of the batch tile.
    bp8 = _round_up(B, 8)
    block = min(block_b, bp8)
    Bp = _round_up(B, block)
    if Bp != B:
        xc = jnp.pad(xc, ((0, Bp - B), (0, 0)))

    weights = (w1c, b1, w2c, b2, w3c, b3, w4c, b4, w5c, b5, w6c, b6p)

    in_specs = [pl.BlockSpec((block, in_dim), lambda i: (i, 0))]
    in_specs += [_const_spec(w.shape) for w in weights]

    out_specs = (
        pl.BlockSpec((block, latent), lambda i: (i, 0)),
        pl.BlockSpec((block, out_pad), lambda i: (i, 0)),
    )
    out_shape = (
        jax.ShapeDtypeStruct((Bp, latent), jnp.float32),
        jax.ShapeDtypeStruct((Bp, out_pad), jnp.float32),
    )

    act_bytes = jnp.dtype(param_dtype).itemsize
    weight_bytes = sum(int(w.size) * w.dtype.itemsize for w in weights)
    flops = 2 * Bp * (in_dim * H1 + H1 * H2 + H2 * latent
                      + latent * H2 + H2 * H1 + H1 * out_pad)
    bytes_accessed = (Bp * in_dim * act_bytes + weight_bytes
                      + Bp * (latent + out_pad) * 4)

    # Rough VMEM budget: weights single-buffered, x/z/xr double-buffered,
    # largest live intermediates are (block, 512) f32. Only set an explicit
    # limit for very large tiles (relevant to v7x's smaller VMEM).
    est_vmem = (weight_bytes
                + 2 * block * in_dim * act_bytes
                + 2 * block * (latent + out_pad) * 4
                + 4 * block * H1 * 4)
    vmem_limit = None
    if est_vmem > 30 * 1024 * 1024:
        vmem_limit = min(int(est_vmem * 3 // 2), 100 * 1024 * 1024)

    z, xr = pl.pallas_call(
        _ae_kernel,
        grid=(Bp // block,),
        in_specs=in_specs,
        out_specs=out_specs,
        out_shape=out_shape,
        compiler_params=pltpu.CompilerParams(
            dimension_semantics=("parallel",),
            vmem_limit_bytes=vmem_limit),
        cost_estimate=pl.CostEstimate(
            flops=flops, transcendentals=0, bytes_accessed=bytes_accessed),
    )(xc, *weights)

    return z[:B], xr[:B, :in_dim]


def init_params(key, input_dim=INPUT_DIM, latent_dim=LATENT_DIM):
    """nn.Linear-style U(-1/sqrt(fan_in), 1/sqrt(fan_in)) init.

    Weights stored [in_features, out_features]; biases [1, out_features]."""
    dims = [(input_dim, H1), (H1, H2), (H2, latent_dim),
            (latent_dim, H2), (H2, H1), (H1, input_dim)]
    params = []
    for (fan_in, fan_out) in dims:
        key, kw, kb = jax.random.split(key, 3)
        bound = 1.0 / jnp.sqrt(float(fan_in))
        w = jax.random.uniform(kw, (fan_in, fan_out), jnp.float32, -bound, bound)
        b = jax.random.uniform(kb, (1, fan_out), jnp.float32, -bound, bound)
        params += [w, b]
    return tuple(params)


def reference_forward(x, params):
    """Plain-JAX f32 reference for correctness checks."""
    (w1, b1, w2, b2, w3, b3, w4, b4, w5, b5, w6, b6) = params
    h = jnp.maximum(x @ w1 + b1, 0.0)
    h = jnp.maximum(h @ w2 + b2, 0.0)
    z = jnp.maximum(h @ w3 + b3, 0.0)
    d = jnp.maximum(z @ w4 + b4, 0.0)
    d = jnp.maximum(d @ w5 + b5, 0.0)
    xr = d @ w6 + b6
    return z, xr


if __name__ == "__main__":
    key = jax.random.PRNGKey(0)
    kx, kp = jax.random.split(key)

    B = 12  # deliberately ragged (not a multiple of 8 or of the batch tile)
    x = jax.random.normal(kx, (B, INPUT_DIM), jnp.float32)
    params = init_params(kp)

    z_ref, xr_ref = reference_forward(x, params)

    # Exact-parity f32 path (single grid step at this small B).
    z32, xr32 = ae_encoder_forward(x, params, block_b=256, param_dtype=jnp.float32)
    jax.block_until_ready((z32, xr32))
    assert z32.shape == (B, LATENT_DIM) and xr32.shape == (B, INPUT_DIM)
    assert jnp.allclose(z32, z_ref, atol=1e-3, rtol=1e-3)
    assert jnp.allclose(xr32, xr_ref, atol=1e-3, rtol=1e-3)

    # Default fast path: bf16 weights/activations, f32 accumulation.
    zbf, xrbf = ae_encoder_forward(x, params)
    jax.block_until_ready((zbf, xrbf))
    assert zbf.shape == (B, LATENT_DIM) and xrbf.shape == (B, INPUT_DIM)
    assert jnp.allclose(zbf, z_ref, atol=5e-2, rtol=5e-2)
    assert jnp.allclose(xrbf, xr_ref, atol=5e-2, rtol=5e-2)

    # Multi-step grid (exercises >1 pipeline step + batch padding path).
    zm, xrm = ae_encoder_forward(x, params, block_b=8, param_dtype=jnp.float32)
    jax.block_until_ready((zm, xrm))
    assert jnp.allclose(zm, z_ref, atol=1e-3, rtol=1e-3)
    assert jnp.allclose(xrm, xr_ref, atol=1e-3, rtol=1e-3)

    print("KERNEL_OK")
</pallas_src>

<mosaic_0001>
module attributes {stable_mosaic.version = 11 : i64} {
  func.func @_ae_kernel(%arg0: i32, %arg1: memref<16x10xf32, #tpu.memory_space<vmem>>, %arg2: memref<10x512xf32, #tpu.memory_space<vmem>>, %arg3: memref<1x512xf32, #tpu.memory_space<vmem>>, %arg4: memref<512x256xf32, #tpu.memory_space<vmem>>, %arg5: memref<1x256xf32, #tpu.memory_space<vmem>>, %arg6: memref<256x128xf32, #tpu.memory_space<vmem>>, %arg7: memref<1x128xf32, #tpu.memory_space<vmem>>, %arg8: memref<128x256xf32, #tpu.memory_space<vmem>>, %arg9: memref<1x256xf32, #tpu.memory_space<vmem>>, %arg10: memref<256x512xf32, #tpu.memory_space<vmem>>, %arg11: memref<1x512xf32, #tpu.memory_space<vmem>>, %arg12: memref<512x128xf32, #tpu.memory_space<vmem>>, %arg13: memref<1x128xf32, #tpu.memory_space<vmem>>, %arg14: memref<16x128xf32, #tpu.memory_space<vmem>>, %arg15: memref<16x128xf32, #tpu.memory_space<vmem>>) attributes {dimension_semantics = [#tpu.dimension_semantics<parallel>], iteration_bounds = array<i64: 1>, scalar_prefetch = 0 : i64, scratch_operands = 0 : i64, tpu.core_type = #tpu.core_type<tc>, window_params = [{transform_indices = @transform_0, window_bounds = array<i64: 16, 10>}, {pipeline_mode = #tpu.pipeline_mode<synchronous>, transform_indices = @transform_1, window_bounds = array<i64: 10, 512>}, {pipeline_mode = #tpu.pipeline_mode<synchronous>, transform_indices = @transform_2, window_bounds = array<i64: 1, 512>}, {pipeline_mode = #tpu.pipeline_mode<synchronous>, transform_indices = @transform_3, window_bounds = array<i64: 512, 256>}, {pipeline_mode = #tpu.pipeline_mode<synchronous>, transform_indices = @transform_4, window_bounds = array<i64: 1, 256>}, {pipeline_mode = #tpu.pipeline_mode<synchronous>, transform_indices = @transform_5, window_bounds = array<i64: 256, 128>}, {pipeline_mode = #tpu.pipeline_mode<synchronous>, transform_indices = @transform_6, window_bounds = array<i64: 1, 128>}, {pipeline_mode = #tpu.pipeline_mode<synchronous>, transform_indices = @transform_7, window_bounds = array<i64: 128, 256>}, {pipeline_mode = #tpu.pipeline_mode<synchronous>, transform_indices = @transform_8, window_bounds = array<i64: 1, 256>}, {pipeline_mode = #tpu.pipeline_mode<synchronous>, transform_indices = @transform_9, window_bounds = array<i64: 256, 512>}, {pipeline_mode = #tpu.pipeline_mode<synchronous>, transform_indices = @transform_10, window_bounds = array<i64: 1, 512>}, {pipeline_mode = #tpu.pipeline_mode<synchronous>, transform_indices = @transform_11, window_bounds = array<i64: 512, 128>}, {pipeline_mode = #tpu.pipeline_mode<synchronous>, transform_indices = @transform_12, window_bounds = array<i64: 1, 128>}, {transform_indices = @transform_13, window_bounds = array<i64: 16, 128>}, {transform_indices = @transform_14, window_bounds = array<i64: 16, 128>}]} {
    %c0 = arith.constant 0 : index
    %c0_0 = arith.constant 0 : index
    %0 = vector.load %arg1[%c0, %c0_0] : memref<16x10xf32, #tpu.memory_space<vmem>>, vector<16x10xf32>
    %c0_1 = arith.constant 0 : index
    %c0_2 = arith.constant 0 : index
    %1 = vector.load %arg2[%c0_1, %c0_2] : memref<10x512xf32, #tpu.memory_space<vmem>>, vector<10x512xf32>
    %cst = arith.constant dense<0.000000e+00> : vector<16x512xf32>
    %2 = tpu.matmul %0, %1, %cst {dimension_numbers = #tpu.dot_dimension_numbers<[1], [0], [0], [1], [0, 0, 1, 1], [], []>} : vector<16x10xf32>, vector<10x512xf32>, vector<16x512xf32> -> vector<16x512xf32>
    %c0_3 = arith.constant 0 : index
    %c0_4 = arith.constant 0 : index
    %3 = vector.load %arg3[%c0_3, %c0_4] : memref<1x512xf32, #tpu.memory_space<vmem>>, vector<1x512xf32>
    %4 = vector.broadcast %3 : vector<1x512xf32> to vector<16x512xf32>
    %5 = arith.addf %2, %4 : vector<16x512xf32>
    %cst_5 = arith.constant 0.000000e+00 : f32
    %6 = vector.broadcast %cst_5 : f32 to vector<16x512xf32>
    %7 = arith.maximumf %5, %6 : vector<16x512xf32>
    %c0_6 = arith.constant 0 : index
    %c0_7 = arith.constant 0 : index
    %8 = vector.load %arg4[%c0_6, %c0_7] : memref<512x256xf32, #tpu.memory_space<vmem>>, vector<512x256xf32>
    %cst_8 = arith.constant dense<0.000000e+00> : vector<16x256xf32>
    %9 = tpu.matmul %7, %8, %cst_8 {dimension_numbers = #tpu.dot_dimension_numbers<[1], [0], [0], [1], [0, 0, 1, 1], [], []>} : vector<16x512xf32>, vector<512x256xf32>, vector<16x256xf32> -> vector<16x256xf32>
    %c0_9 = arith.constant 0 : index
    %c0_10 = arith.constant 0 : index
    %10 = vector.load %arg5[%c0_9, %c0_10] : memref<1x256xf32, #tpu.memory_space<vmem>>, vector<1x256xf32>
    %11 = vector.broadcast %10 : vector<1x256xf32> to vector<16x256xf32>
    %12 = arith.addf %9, %11 : vector<16x256xf32>
    %cst_11 = arith.constant 0.000000e+00 : f32
    %13 = vector.broadcast %cst_11 : f32 to vector<16x256xf32>
    %14 = arith.maximumf %12, %13 : vector<16x256xf32>
    %c0_12 = arith.constant 0 : index
    %c0_13 = arith.constant 0 : index
    %15 = vector.load %arg6[%c0_12, %c0_13] : memref<256x128xf32, #tpu.memory_space<vmem>>, vector<256x128xf32>
    %cst_14 = arith.constant dense<0.000000e+00> : vector<16x128xf32>
    %16 = tpu.matmul %14, %15, %cst_14 {dimension_numbers = #tpu.dot_dimension_numbers<[1], [0], [0], [1], [0, 0, 1, 1], [], []>} : vector<16x256xf32>, vector<256x128xf32>, vector<16x128xf32> -> vector<16x128xf32>
    %c0_15 = arith.constant 0 : index
    %c0_16 = arith.constant 0 : index
    %17 = vector.load %arg7[%c0_15, %c0_16] : memref<1x128xf32, #tpu.memory_space<vmem>>, vector<1x128xf32>
    %18 = vector.broadcast %17 : vector<1x128xf32> to vector<16x128xf32>
    %19 = arith.addf %16, %18 : vector<16x128xf32>
    %cst_17 = arith.constant 0.000000e+00 : f32
    %20 = vector.broadcast %cst_17 : f32 to vector<16x128xf32>
    %21 = arith.maximumf %19, %20 : vector<16x128xf32>
    %c0_18 = arith.constant 0 : index
    %c0_19 = arith.constant 0 : index
    %22 = vector.load %arg14[%c0_18, %c0_19] : memref<16x128xf32, #tpu.memory_space<vmem>>, vector<16x128xf32>
    tpu.vector_store %arg14[%c0_18, %c0_19], %21 {strides = array<i32>} : memref<16x128xf32, #tpu.memory_space<vmem>>, vector<16x128xf32>,
    %c0_20 = arith.constant 0 : index
    %c0_21 = arith.constant 0 : index
    %23 = vector.load %arg8[%c0_20, %c0_21] : memref<128x256xf32, #tpu.memory_space<vmem>>, vector<128x256xf32>
    %cst_22 = arith.constant dense<0.000000e+00> : vector<16x256xf32>
    %24 = tpu.matmul %21, %23, %cst_22 {dimension_numbers = #tpu.dot_dimension_numbers<[1], [0], [0], [1], [0, 0, 1, 1], [], []>} : vector<16x128xf32>, vector<128x256xf32>, vector<16x256xf32> -> vector<16x256xf32>
    %c0_23 = arith.constant 0 : index
    %c0_24 = arith.constant 0 : index
    %25 = vector.load %arg9[%c0_23, %c0_24] : memref<1x256xf32, #tpu.memory_space<vmem>>, vector<1x256xf32>
    %26 = vector.broadcast %25 : vector<1x256xf32> to vector<16x256xf32>
    %27 = arith.addf %24, %26 : vector<16x256xf32>
    %cst_25 = arith.constant 0.000000e+00 : f32
    %28 = vector.broadcast %cst_25 : f32 to vector<16x256xf32>
    %29 = arith.maximumf %27, %28 : vector<16x256xf32>
    %c0_26 = arith.constant 0 : index
    %c0_27 = arith.constant 0 : index
    %30 = vector.load %arg10[%c0_26, %c0_27] : memref<256x512xf32, #tpu.memory_space<vmem>>, vector<256x512xf32>
    %cst_28 = arith.constant dense<0.000000e+00> : vector<16x512xf32>
    %31 = tpu.matmul %29, %30, %cst_28 {dimension_numbers = #tpu.dot_dimension_numbers<[1], [0], [0], [1], [0, 0, 1, 1], [], []>} : vector<16x256xf32>, vector<256x512xf32>, vector<16x512xf32> -> vector<16x512xf32>
    %c0_29 = arith.constant 0 : index
    %c0_30 = arith.constant 0 : index
    %32 = vector.load %arg11[%c0_29, %c0_30] : memref<1x512xf32, #tpu.memory_space<vmem>>, vector<1x512xf32>
    %33 = vector.broadcast %32 : vector<1x512xf32> to vector<16x512xf32>
    %34 = arith.addf %31, %33 : vector<16x512xf32>
    %cst_31 = arith.constant 0.000000e+00 : f32
    %35 = vector.broadcast %cst_31 : f32 to vector<16x512xf32>
    %36 = arith.maximumf %34, %35 : vector<16x512xf32>
    %c0_32 = arith.constant 0 : index
    %c0_33 = arith.constant 0 : index
    %37 = vector.load %arg12[%c0_32, %c0_33] : memref<512x128xf32, #tpu.memory_space<vmem>>, vector<512x128xf32>
    %cst_34 = arith.constant dense<0.000000e+00> : vector<16x128xf32>
    %38 = tpu.matmul %36, %37, %cst_34 {dimension_numbers = #tpu.dot_dimension_numbers<[1], [0], [0], [1], [0, 0, 1, 1], [], []>} : vector<16x512xf32>, vector<512x128xf32>, vector<16x128xf32> -> vector<16x128xf32>
    %c0_35 = arith.constant 0 : index
    %c0_36 = arith.constant 0 : index
    %39 = vector.load %arg13[%c0_35, %c0_36] : memref<1x128xf32, #tpu.memory_space<vmem>>, vector<1x128xf32>
    %40 = vector.broadcast %39 : vector<1x128xf32> to vector<16x128xf32>
    %41 = arith.addf %38, %40 : vector<16x128xf32>
    %c0_37 = arith.constant 0 : index
    %c0_38 = arith.constant 0 : index
    %42 = vector.load %arg15[%c0_37, %c0_38] : memref<16x128xf32, #tpu.memory_space<vmem>>, vector<16x128xf32>
    tpu.vector_store %arg15[%c0_37, %c0_38], %41 {strides = array<i32>} : memref<16x128xf32, #tpu.memory_space<vmem>>, vector<16x128xf32>,
    return
  }
  func.func @transform_0(%arg0: i32) -> (i32, i32) {
    %c0_i32 = arith.constant 0 : i32
    %c0_i32_0 = arith.constant 0 : i32
    return %arg0, %c0_i32 : i32, i32
  }
  func.func @transform_1(%arg0: i32) -> (i32, i32) {
    %c0_i32 = arith.constant 0 : i32
    %c0_i32_0 = arith.constant 0 : i32
    %c0_i32_1 = arith.constant 0 : i32
    return %c0_i32, %c0_i32_0 : i32, i32
  }
  func.func @transform_2(%arg0: i32) -> (i32, i32) {
    %c0_i32 = arith.constant 0 : i32
    %c0_i32_0 = arith.constant 0 : i32
    %c0_i32_1 = arith.constant 0 : i32
    return %c0_i32, %c0_i32_0 : i32, i32
  }
  func.func @transform_3(%arg0: i32) -> (i32, i32) {
    %c0_i32 = arith.constant 0 : i32
    %c0_i32_0 = arith.constant 0 : i32
    %c0_i32_1 = arith.constant 0 : i32
    return %c0_i32, %c0_i32_0 : i32, i32
  }
  func.func @transform_4(%arg0: i32) -> (i32, i32) {
    %c0_i32 = arith.constant 0 : i32
    %c0_i32_0 = arith.constant 0 : i32
    %c0_i32_1 = arith.constant 0 : i32
    return %c0_i32, %c0_i32_0 : i32, i32
  }
  func.func @transform_5(%arg0: i32) -> (i32, i32) {
    %c0_i32 = arith.constant 0 : i32
    %c0_i32_0 = arith.constant 0 : i32
    %c0_i32_1 = arith.constant 0 : i32
    return %c0_i32, %c0_i32_0 : i32, i32
  }
  func.func @transform_6(%arg0: i32) -> (i32, i32) {
    %c0_i32 = arith.constant 0 : i32
    %c0_i32_0 = arith.constant 0 : i32
    %c0_i32_1 = arith.constant 0 : i32
    return %c0_i32, %c0_i32_0 : i32, i32
  }
  func.func @transform_7(%arg0: i32) -> (i32, i32) {
    %c0_i32 = arith.constant 0 : i32
    %c0_i32_0 = arith.constant 0 : i32
    %c0_i32_1 = arith.constant 0 : i32
    return %c0_i32, %c0_i32_0 : i32, i32
  }
  func.func @transform_8(%arg0: i32) -> (i32, i32) {
    %c0_i32 = arith.constant 0 : i32
    %c0_i32_0 = arith.constant 0 : i32
    %c0_i32_1 = arith.constant 0 : i32
    return %c0_i32, %c0_i32_0 : i32, i32
  }
  func.func @transform_9(%arg0: i32) -> (i32, i32) {
    %c0_i32 = arith.constant 0 : i32
    %c0_i32_0 = arith.constant 0 : i32
    %c0_i32_1 = arith.constant 0 : i32
    return %c0_i32, %c0_i32_0 : i32, i32
  }
  func.func @transform_10(%arg0: i32) -> (i32, i32) {
    %c0_i32 = arith.constant 0 : i32
    %c0_i32_0 = arith.constant 0 : i32
    %c0_i32_1 = arith.constant 0 : i32
    return %c0_i32, %c0_i32_0 : i32, i32
  }
  func.func @transform_11(%arg0: i32) -> (i32, i32) {
    %c0_i32 = arith.constant 0 : i32
    %c0_i32_0 = arith.constant 0 : i32
    %c0_i32_1 = arith.constant 0 : i32
    return %c0_i32, %c0_i32_0 : i32, i32
  }
  func.func @transform_12(%arg0: i32) -> (i32, i32) {
    %c0_i32 = arith.constant 0 : i32
    %c0_i32_0 = arith.constant 0 : i32
    %c0_i32_1 = arith.constant 0 : i32
    return %c0_i32, %c0_i32_0 : i32, i32
  }
  func.func @transform_13(%arg0: i32) -> (i32, i32) {
    %c0_i32 = arith.constant 0 : i32
    %c0_i32_0 = arith.constant 0 : i32
    return %arg0, %c0_i32 : i32, i32
  }
  func.func @transform_14(%arg0: i32) -> (i32, i32) {
    %c0_i32 = arith.constant 0 : i32
    %c0_i32_0 = arith.constant 0 : i32
    return %arg0, %c0_i32 : i32, i32
  }
}

</mosaic_0001>

<bundles_post_ra>
// kernel: ae_encoder_forward.1
= control target key start
LH: loop header
LB: loop body
LE: loop exit
PB: predicated region body
PF: predicated region fallthrough
CT: control target
= control target key end

     0   :  { %20 = vsyncpa [#allocation3], 0  ;;  %vm75_vm0 = vcmask 1041408   ;;  %vm68_vm1 = vcmask 80896   ;;  %s2581_s0 = inlined_call_operand.vmem [shape: f32[16,10], index: 0, kind: input, shape index: {}]   ;;  %s2582_s1 = inlined_call_operand.vmem [shape: f32[10,512], index: 1, kind: input, shape index: {}]   ;;  %s2583_s2 = inlined_call_operand.vmem [shape: f32[1,512], index: 2, kind: input, shape index: {}]   ;;  %s2584_s3 = inlined_call_operand.vmem [shape: f32[512,256], index: 3, kind: input, shape index: {}]   ;;  %s2585_s4 = inlined_call_operand.vmem [shape: f32[1,256], index: 4, kind: input, shape index: {}]   ;;  %s2586_s5 = inlined_call_operand.vmem [shape: f32[256,128], index: 5, kind: input, shape index: {}]   ;;  %s2587_s6 = inlined_call_operand.vmem [shape: f32[1,128], index: 6, kind: input, shape index: {}]   ;;  %s2588_s7 = inlined_call_operand.vmem [shape: f32[128,256], index: 7, kind: input, shape index: {}]   ;;  %s2589_s8 = inlined_call_operand.vmem [shape: f32[1,256], index: 8, kind: input, shape index: {}]   ;;  %s2590_s9 = inlined_call_operand.vmem [shape: f32[256,512], index: 9, kind: input, shape index: {}]   ;;  %s2591_s10 = inlined_call_operand.vmem [shape: f32[1,512], index: 10, kind: input, shape index: {}]   ;;  %s2592_s11 = inlined_call_operand.vmem [shape: f32[512,128], index: 11, kind: input, shape index: {}]   ;;  %s2593_s12 = inlined_call_operand.vmem [shape: f32[1,128], index: 12, kind: input, shape index: {}]   ;;  %s2594_s13 = inlined_call_operand.hbm [shape: f32[16,128], index: 13, kind: output, shape index: {0}]   ;;  %s2595_s14 = inlined_call_operand.hbm [shape: f32[16,128], index: 14, kind: output, shape index: {1}]  }
   0x1   :  { %v54_v0 = vld [vmem:[%s2582_s1 + $0x20] sm:$0x3]  ;;  %v55_v1 = vld [vmem:[%s2582_s1 + $0x28] sm:$0x3]  ;;  %v56_v3 = vld [vmem:[%s2582_s1 + $0x30] sm:$0x3] }
   0x2   :  { %v50_v2 = vld [vmem:[%s2582_s1] sm:$0xff]  ;;  %1212 = vmatpush.msk.msra.mxu0 %vm75_vm0, %v54_v0  ;;  %1215 = vmatpush.msk.msra.mxu1 %vm75_vm0, %v55_v1  ;;  %v57_v4 = vld [vmem:[%s2582_s1 + $0x38] sm:$0x3]  ;;  %v51_v5 = vld [vmem:[%s2582_s1 + $0x8] sm:$0xff] }
   0x3   :  { %1218 = vmatpush.msk.msra.mxu2 %vm75_vm0, %v56_v3  ;;  %1221 = vmatpush.msk.msra.mxu3 %vm75_vm0, %v57_v4  ;;  %v52_v6 = vld [vmem:[%s2582_s1 + $0x10] sm:$0xff]  ;;  %v53_v7 = vld [vmem:[%s2582_s1 + $0x18] sm:$0xff]  ;;  %v48_v8 = vld [vmem:[%s2581_s0] sm:$0xff] }
   0x4   :  { %103 = vmatpush.msra.mxu0 %v50_v2  ;;  %126 = vmatpush.msra.mxu1 %v51_v5  ;;  %v218_v9 = vld [vmem:[%s2584_s3 + $0xf0] sm:$0xff]  ;;  %v216_v11 = vld [vmem:[%s2584_s3 + $0xe0] sm:$0xff]  ;;  %v49_v21 = vld [vmem:[%s2581_s0 + $0x8] sm:$0xff] }
   0x5   :  { %149 = vmatpush.msra.mxu2 %v52_v6  ;;  %172 = vmatpush.msra.mxu3 %v53_v7  ;;  %v250_v10 = vld [vmem:[%s2584_s3 + $0x1f0] sm:$0xff]  ;;  %v248_v12 = vld [vmem:[%s2584_s3 + $0x1e0] sm:$0xff] }
   0x6   :  { %1213 = vmatmul.msk.f32.vlgmr.msra.gmra.mxu0 %vm68_vm1, %v48_v8  ;;  %1216 = vmatmul.msk.f32.vlgmr.msra.gmra.mxu1 %vm68_vm1, %v48_v8  ;;  %v282_v13 = vld [vmem:[%s2584_s3 + $0x2f0] sm:$0xff]  ;;  %v280_v15 = vld [vmem:[%s2584_s3 + $0x2e0] sm:$0xff] }
   0x7   :  { %1219 = vmatmul.msk.f32.vlgmr.msra.gmra.mxu2 %vm68_vm1, %v48_v8  ;;  %1222 = vmatmul.msk.f32.vlgmr.msra.gmra.mxu3 %vm68_vm1, %v48_v8  ;;  %v314_v14 = vld [vmem:[%s2584_s3 + $0x3f0] sm:$0xff]  ;;  %v312_v16 = vld [vmem:[%s2584_s3 + $0x3e0] sm:$0xff] }
   0x8   :  { %322 = vmatpush.msrb.mxu0 %v218_v9  ;;  %345 = vmatpush.msrb.mxu1 %v250_v10  ;;  %v214_v17 = vld [vmem:[%s2584_s3 + $0xd0] sm:$0xff]  ;;  %v212_v22 = vld [vmem:[%s2584_s3 + $0xc0] sm:$0xff] }
   0x9   :  { %v246_v18 = vld [vmem:[%s2584_s3 + $0x1d0] sm:$0xff]  ;;  %368 = vmatpush.msrb.mxu2 %v282_v13  ;;  %391 = vmatpush.msrb.mxu3 %v314_v14  ;;  %v244_v23 = vld [vmem:[%s2584_s3 + $0x1c0] sm:$0xff] }
   0xa   :  { %323 = vmatpush.msrb.mxu0 %v216_v11  ;;  %346 = vmatpush.msrb.mxu1 %v248_v12  ;;  %v278_v19 = vld [vmem:[%s2584_s3 + $0x2d0] sm:$0xff]  ;;  %v276_v24 = vld [vmem:[%s2584_s3 + $0x2c0] sm:$0xff] }
   0xb   :  { %v310_v20 = vld [vmem:[%s2584_s3 + $0x3d0] sm:$0xff]  ;;  %369 = vmatpush.msrb.mxu2 %v280_v15  ;;  %392 = vmatpush.msrb.mxu3 %v312_v16  ;;  %v308_v25 = vld [vmem:[%s2584_s3 + $0x3c0] sm:$0xff] }
   0xc   :  { %324 = vmatpush.msrb.mxu0 %v214_v17  ;;  %347 = vmatpush.msrb.mxu1 %v246_v18  ;;  %v210_v26 = vld [vmem:[%s2584_s3 + $0xb0] sm:$0xff]  ;;  %v208_v30 = vld [vmem:[%s2584_s3 + $0xa0] sm:$0xff] }
   0xd   :  { %370 = vmatpush.msrb.mxu2 %v278_v19  ;;  %393 = vmatpush.msrb.mxu3 %v310_v20  ;;  %v242_v27 = vld [vmem:[%s2584_s3 + $0x1b0] sm:$0xff]  ;;  %v240_v31 = vld [vmem:[%s2584_s3 + $0x1a0] sm:$0xff] }
   0xe   :  { %1214 = vmatmul.msk.f32.gmra.mxu0 %vm68_vm1, %v49_v21  ;;  %1217 = vmatmul.msk.f32.gmra.mxu1 %vm68_vm1, %v49_v21  ;;  %v274_v28 = vld [vmem:[%s2584_s3 + $0x2b0] sm:$0xff]  ;;  %v272_v32 = vld [vmem:[%s2584_s3 + $0x2a0] sm:$0xff] }
   0xf   :  { %1220 = vmatmul.msk.f32.gmra.mxu2 %vm68_vm1, %v49_v21  ;;  %1223 = vmatmul.msk.f32.gmra.mxu3 %vm68_vm1, %v49_v21  ;;  %v306_v29 = vld [vmem:[%s2584_s3 + $0x3b0] sm:$0xff]  ;;  %v304_v33 = vld [vmem:[%s2584_s3 + $0x3a0] sm:$0xff] }
  0x10   :  { %325 = vmatpush.msrb.mxu0 %v212_v22  ;;  %348 = vmatpush.msrb.mxu1 %v244_v23  ;;  %v206_v34 = vld [vmem:[%s2584_s3 + $0x90] sm:$0xff]  ;;  %v204_v38 = vld [vmem:[%s2584_s3 + $0x80] sm:$0xff] }
  0x11   :  { %371 = vmatpush.msrb.mxu2 %v276_v24  ;;  %394 = vmatpush.msrb.mxu3 %v308_v25  ;;  %v238_v35 = vld [vmem:[%s2584_s3 + $0x190] sm:$0xff]  ;;  %v236_v39 = vld [vmem:[%s2584_s3 + $0x180] sm:$0xff] }
  0x12   :  { %326 = vmatpush.msrb.mxu0 %v210_v26  ;;  %349 = vmatpush.msrb.mxu1 %v242_v27  ;;  %v270_v36 = vld [vmem:[%s2584_s3 + $0x290] sm:$0xff]  ;;  %v268_v40 = vld [vmem:[%s2584_s3 + $0x280] sm:$0xff] }
  0x13   :  { %372 = vmatpush.msrb.mxu2 %v274_v28  ;;  %395 = vmatpush.msrb.mxu3 %v306_v29  ;;  %v302_v37 = vld [vmem:[%s2584_s3 + $0x390] sm:$0xff]  ;;  %v300_v41 = vld [vmem:[%s2584_s3 + $0x380] sm:$0xff] }
  0x14   :  { %327 = vmatpush.msrb.mxu0 %v208_v30  ;;  %350 = vmatpush.msrb.mxu1 %v240_v31  ;;  %v202_v42 = vld [vmem:[%s2584_s3 + $0x70] sm:$0xff]  ;;  %v200_v46 = vld [vmem:[%s2584_s3 + $0x60] sm:$0xff] }
  0x15   :  { %373 = vmatpush.msrb.mxu2 %v272_v32  ;;  %396 = vmatpush.msrb.mxu3 %v304_v33  ;;  %v234_v43 = vld [vmem:[%s2584_s3 + $0x170] sm:$0xff]  ;;  %v232_v47 = vld [vmem:[%s2584_s3 + $0x160] sm:$0xff] }
  0x16   :  { %328 = vmatpush.msrb.mxu0 %v206_v34  ;;  %351 = vmatpush.msrb.mxu1 %v238_v35  ;;  %v266_v44 = vld [vmem:[%s2584_s3 + $0x270] sm:$0xff]  ;;  %v264_v48 = vld [vmem:[%s2584_s3 + $0x260] sm:$0xff] }
  0x17   :  { %374 = vmatpush.msrb.mxu2 %v270_v36  ;;  %397 = vmatpush.msrb.mxu3 %v302_v37  ;;  %v298_v45 = vld [vmem:[%s2584_s3 + $0x370] sm:$0xff]  ;;  %v296_v49 = vld [vmem:[%s2584_s3 + $0x360] sm:$0xff] }
  0x18   :  { %329 = vmatpush.msrb.mxu0 %v204_v38  ;;  %352 = vmatpush.msrb.mxu1 %v236_v39  ;;  %v198_v50 = vld [vmem:[%s2584_s3 + $0x50] sm:$0xff]  ;;  %v196_v54 = vld [vmem:[%s2584_s3 + $0x40] sm:$0xff] }
  0x19   :  { %375 = vmatpush.msrb.mxu2 %v268_v40  ;;  %398 = vmatpush.msrb.mxu3 %v300_v41  ;;  %v230_v51 = vld [vmem:[%s2584_s3 + $0x150] sm:$0xff]  ;;  %v228_v55 = vld [vmem:[%s2584_s3 + $0x140] sm:$0xff] }
  0x1a   :  { %330 = vmatpush.msrb.mxu0 %v202_v42  ;;  %353 = vmatpush.msrb.mxu1 %v234_v43  ;;  %v262_v52 = vld [vmem:[%s2584_s3 + $0x250] sm:$0xff]  ;;  %v260_v57 = vld [vmem:[%s2584_s3 + $0x240] sm:$0xff] }
  0x1b   :  { %376 = vmatpush.msrb.mxu2 %v266_v44  ;;  %399 = vmatpush.msrb.mxu3 %v298_v45  ;;  %v294_v53 = vld [vmem:[%s2584_s3 + $0x350] sm:$0xff]  ;;  %v292_v58 = vld [vmem:[%s2584_s3 + $0x340] sm:$0xff] }
  0x1c   :  { %331 = vmatpush.msrb.mxu0 %v200_v46  ;;  %354 = vmatpush.msrb.mxu1 %v232_v47  ;;  %v194_v56 = vld [vmem:[%s2584_s3 + $0x30] sm:$0xff] }
  0x1d   :  { %377 = vmatpush.msrb.mxu2 %v264_v48  ;;  %400 = vmatpush.msrb.mxu3 %v296_v49  ;;  %v226_v59 = vld [vmem:[%s2584_s3 + $0x130] sm:$0xff] }
  0x1e   :  { %332 = vmatpush.msrb.mxu0 %v198_v50  ;;  %355 = vmatpush.msrb.mxu1 %v230_v51 }
  0x1f   :  { %378 = vmatpush.msrb.mxu2 %v262_v52  ;;  %401 = vmatpush.msrb.mxu3 %v294_v53 }
  0x20   :  { %21 = vsyncpa [#allocation5], 0  ;;  %333 = vmatpush.msrb.mxu0 %v196_v54  ;;  %356 = vmatpush.msrb.mxu1 %v228_v55  ;;  %v258_v60 = vld [vmem:[%s2584_s3 + $0x230] sm:$0xff]  ;;  %v192_v62 = vld [vmem:[%s2584_s3 + $0x20] sm:$0xff]  ;;  %s1182_s25 = sshll.u32 %s2594_s13, 4  ;;  %s1283_s26 = smov 128   ;;  %s1183_s25 = int_to_ptr.hbm [resolvable:$true] %s1182_s25 }
  0x21   :  { %v290_v61 = vld [vmem:[%s2584_s3 + $0x330] sm:$0xff]  ;;  %v224_v63 = vld [vmem:[%s2584_s3 + $0x120] sm:$0xff]  ;;  %379 = vmatpush.msrb.mxu2 %v260_v57  ;;  %402 = vmatpush.msrb.mxu3 %v292_v58  ;;  %v219_v8 = vld [vmem:[%s2584_s3 + $0xf8] sm:$0xff]  ;;  %s1284_s27 = smov 8   ;;  %s1285_s13 = smov [#allocation4]  }
  0x22   :  { %334 = vmatpush.msrb.mxu0 %v194_v56  ;;  %357 = vmatpush.msrb.mxu1 %v226_v59  ;;  %v256_v0 = vld [vmem:[%s2584_s3 + $0x220] sm:$0xff]  ;;  %v190_v2 = vld [vmem:[%s2584_s3 + $0x10] sm:$0xff]  ;;  %v251_v9 = vld [vmem:[%s2584_s3 + $0x1f8] sm:$0xff]  ;;  %s1195_s29 = sshll.u32 %s2595_s14, 4  ;;  %s1196_s29 = int_to_ptr.hbm [resolvable:$true] %s1195_s29 }
  0x23   :  { %v288_v1 = vld [vmem:[%s2584_s3 + $0x320] sm:$0xff]  ;;  %v222_v3 = vld [vmem:[%s2584_s3 + $0x110] sm:$0xff]  ;;  %380 = vmatpush.msrb.mxu2 %v258_v60  ;;  %403 = vmatpush.msrb.mxu3 %v290_v61  ;;  %v217_v12 = vld [vmem:[%s2584_s3 + $0xe8] sm:$0xff] }
  0x24   :  { %335 = vmatpush.msrb.mxu0 %v192_v62  ;;  %358 = vmatpush.msrb.mxu1 %v224_v63  ;;  %v254_v4 = vld [vmem:[%s2584_s3 + $0x210] sm:$0xff]  ;;  %v188_v6 = vld [vmem:[%s2584_s3] sm:$0xff]  ;;  %v249_v13 = vld [vmem:[%s2584_s3 + $0x1e8] sm:$0xff] }
  0x25   :  { %v286_v5 = vld [vmem:[%s2584_s3 + $0x310] sm:$0xff]  ;;  %v220_v7 = vld [vmem:[%s2584_s3 + $0x100] sm:$0xff]  ;;  %381 = vmatpush.msrb.mxu2 %v256_v0  ;;  %404 = vmatpush.msrb.mxu3 %v288_v1  ;;  %v283_v14 = vld [vmem:[%s2584_s3 + $0x2f8] sm:$0xff] }
  0x26   :  { %336 = vmatpush.msrb.mxu0 %v190_v2  ;;  %359 = vmatpush.msrb.mxu1 %v222_v3  ;;  %v252_v10 = vld [vmem:[%s2584_s3 + $0x200] sm:$0xff]  ;;  %v315_v15 = vld [vmem:[%s2584_s3 + $0x3f8] sm:$0xff]  ;;  %v281_v18 = vld [vmem:[%s2584_s3 + $0x2e8] sm:$0xff] }
  0x27   :  { %382 = vmatpush.msrb.mxu2 %v254_v4  ;;  %405 = vmatpush.msrb.mxu3 %v286_v5  ;;  %v284_v11 = vld [vmem:[%s2584_s3 + $0x300] sm:$0xff]  ;;  %v215_v16 = vld [vmem:[%s2584_s3 + $0xd8] sm:$0xff]  ;;  %v313_v19 = vld [vmem:[%s2584_s3 + $0x3e8] sm:$0xff] }
  0x28   :  { %337 = vmatpush.msrb.mxu0 %v188_v6  ;;  %360 = vmatpush.msrb.mxu1 %v220_v7  ;;  %v247_v17 = vld [vmem:[%s2584_s3 + $0x1d8] sm:$0xff]  ;;  %v213_v20 = vld [vmem:[%s2584_s3 + $0xc8] sm:$0xff] }
  0x29   :  { %383 = vmatpush.msrb.mxu2 %v252_v10  ;;  %406 = vmatpush.msrb.mxu3 %v284_v11  ;;  %v245_v21 = vld [vmem:[%s2584_s3 + $0x1c8] sm:$0xff]  ;;  %v211_v22 = vld [vmem:[%s2584_s3 + $0xb8] sm:$0xff]  ;;  %v58_v10 = vld [vmem:[%s2583_s2] sm:$0xf] }
  0x2a   :  { %414 = vmatpush.msra.mxu0 %v219_v8  ;;  %437 = vmatpush.msra.mxu1 %v251_v9  ;;  %v243_v23 = vld [vmem:[%s2584_s3 + $0x1b8] sm:$0xff]  ;;  %v209_v24 = vld [vmem:[%s2584_s3 + $0xa8] sm:$0xff]  ;;  %v60_v11 = vperm.slane %v58_v10, 0 }
  0x2b   :  { %460 = vmatpush.msra.mxu2 %v283_v14  ;;  %483 = vmatpush.msra.mxu3 %v315_v15  ;;  %v241_v25 = vld [vmem:[%s2584_s3 + $0x1a8] sm:$0xff]  ;;  %v279_v26 = vld [vmem:[%s2584_s3 + $0x2d8] sm:$0xff] }
  0x2c   :  { %415 = vmatpush.msra.mxu0 %v217_v12  ;;  %438 = vmatpush.msra.mxu1 %v249_v13  ;;  %v311_v27 = vld [vmem:[%s2584_s3 + $0x3d8] sm:$0xff]  ;;  %v277_v30 = vld [vmem:[%s2584_s3 + $0x2c8] sm:$0xff]  ;;  %v61_v12 = vperm.slane %v58_v10, 1 }
  0x2d   :  { %461 = vmatpush.msra.mxu2 %v281_v18  ;;  %484 = vmatpush.msra.mxu3 %v313_v19  ;;  %v207_v28 = vld [vmem:[%s2584_s3 + $0x98] sm:$0xff]  ;;  %v309_v31 = vld [vmem:[%s2584_s3 + $0x3c8] sm:$0xff]  ;;  %v62_v19 = vperm.slane %v58_v10, 2 }
  0x2e   :  { %416 = vmatpush.msra.mxu0 %v215_v16  ;;  %439 = vmatpush.msra.mxu1 %v247_v17  ;;  %v239_v29 = vld [vmem:[%s2584_s3 + $0x198] sm:$0xff]  ;;  %v205_v32 = vld [vmem:[%s2584_s3 + $0x88] sm:$0xff] }
  0x2f   :  { %462 = vmatpush.msra.mxu2 %v279_v26  ;;  %485 = vmatpush.msra.mxu3 %v311_v27  ;;  %v237_v33 = vld [vmem:[%s2584_s3 + $0x188] sm:$0xff]  ;;  %v275_v34 = vld [vmem:[%s2584_s3 + $0x2b8] sm:$0xff] }
  0x30   :  { %417 = vmatpush.msra.mxu0 %v213_v20  ;;  %440 = vmatpush.msra.mxu1 %v245_v21  ;;  %v307_v35 = vld [vmem:[%s2584_s3 + $0x3b8] sm:$0xff]  ;;  %v273_v38 = vld [vmem:[%s2584_s3 + $0x2a8] sm:$0xff]  ;;  %v63_v20 = vperm.slane %v58_v10, 3 }
  0x31   :  { %463 = vmatpush.msra.mxu2 %v277_v30  ;;  %486 = vmatpush.msra.mxu3 %v309_v31  ;;  %v203_v36 = vld [vmem:[%s2584_s3 + $0x78] sm:$0xff]  ;;  %v305_v39 = vld [vmem:[%s2584_s3 + $0x3a8] sm:$0xff] }
  0x32   :  { %418 = vmatpush.msra.mxu0 %v211_v22  ;;  %441 = vmatpush.msra.mxu1 %v243_v23  ;;  %v235_v37 = vld [vmem:[%s2584_s3 + $0x178] sm:$0xff]  ;;  %v201_v40 = vld [vmem:[%s2584_s3 + $0x68] sm:$0xff]  ;;  %v524_v22 = vld [vmem:[%s2586_s5 + $0x70] sm:$0xff] }
  0x33   :  { %464 = vmatpush.msra.mxu2 %v275_v34  ;;  %487 = vmatpush.msra.mxu3 %v307_v35  ;;  %v233_v41 = vld [vmem:[%s2584_s3 + $0x168] sm:$0xff]  ;;  %v271_v42 = vld [vmem:[%s2584_s3 + $0x298] sm:$0xff] }
  0x34   :  { %419 = vmatpush.msra.mxu0 %v209_v24  ;;  %442 = vmatpush.msra.mxu1 %v241_v25  ;;  %v303_v43 = vld [vmem:[%s2584_s3 + $0x398] sm:$0xff]  ;;  %v269_v46 = vld [vmem:[%s2584_s3 + $0x288] sm:$0xff] }
  0x35   :  { %465 = vmatpush.msra.mxu2 %v273_v38  ;;  %488 = vmatpush.msra.mxu3 %v305_v39  ;;  %v199_v44 = vld [vmem:[%s2584_s3 + $0x58] sm:$0xff]  ;;  %v301_v47 = vld [vmem:[%s2584_s3 + $0x388] sm:$0xff] }
  0x36   :  { %420 = vmatpush.msra.mxu0 %v207_v28  ;;  %443 = vmatpush.msra.mxu1 %v239_v29  ;;  %v231_v45 = vld [vmem:[%s2584_s3 + $0x158] sm:$0xff]  ;;  %v197_v48 = vld [vmem:[%s2584_s3 + $0x48] sm:$0xff] }
  0x37   :  { %466 = vmatpush.msra.mxu2 %v271_v42  ;;  %489 = vmatpush.msra.mxu3 %v303_v43  ;;  %v229_v49 = vld [vmem:[%s2584_s3 + $0x148] sm:$0xff]  ;;  %v267_v50 = vld [vmem:[%s2584_s3 + $0x278] sm:$0xff] }
  0x38   :  { %421 = vmatpush.msra.mxu0 %v205_v32  ;;  %444 = vmatpush.msra.mxu1 %v237_v33  ;;  %v299_v51 = vld [vmem:[%s2584_s3 + $0x378] sm:$0xff]  ;;  %v265_v54 = vld [vmem:[%s2584_s3 + $0x268] sm:$0xff] }
  0x39   :  { %467 = vmatpush.msra.mxu2 %v269_v46  ;;  %490 = vmatpush.msra.mxu3 %v301_v47  ;;  %v195_v52 = vld [vmem:[%s2584_s3 + $0x38] sm:$0xff]  ;;  %v297_v55 = vld [vmem:[%s2584_s3 + $0x368] sm:$0xff]  ;;  %v518_v46 = vld [vmem:[%s2586_s5 + $0x40] sm:$0xff] }
  0x3a   :  { %422 = vmatpush.msra.mxu0 %v203_v36  ;;  %445 = vmatpush.msra.mxu1 %v235_v37  ;;  %v227_v53 = vld [vmem:[%s2584_s3 + $0x138] sm:$0xff]  ;;  %v193_v56 = vld [vmem:[%s2584_s3 + $0x28] sm:$0xff]  ;;  %v522_v36 = vld [vmem:[%s2586_s5 + $0x60] sm:$0xff] }
  0x3b   :  { %468 = vmatpush.msra.mxu2 %v267_v50  ;;  %491 = vmatpush.msra.mxu3 %v299_v51  ;;  %v225_v57 = vld [vmem:[%s2584_s3 + $0x128] sm:$0xff]  ;;  %v263_v58 = vld [vmem:[%s2584_s3 + $0x258] sm:$0xff]  ;;  %v540_v50 = vld [vmem:[%s2586_s5 + $0xf0] sm:$0xff] }
  0x3c   :  { %423 = vmatpush.msra.mxu0 %v201_v40  ;;  %446 = vmatpush.msra.mxu1 %v233_v41  ;;  %v295_v59 = vld [vmem:[%s2584_s3 + $0x358] sm:$0xff]  ;;  %v261_v62 = vld [vmem:[%s2584_s3 + $0x248] sm:$0xff]  ;;  %v520_v40 = vld [vmem:[%s2586_s5 + $0x50] sm:$0xff] }
  0x3d   :  { %469 = vmatpush.msra.mxu2 %v265_v54  ;;  %492 = vmatpush.msra.mxu3 %v297_v55  ;;  %v191_v60 = vld [vmem:[%s2584_s3 + $0x18] sm:$0xff]  ;;  %v293_v63 = vld [vmem:[%s2584_s3 + $0x348] sm:$0xff]  ;;  %v538_v54 = vld [vmem:[%s2586_s5 + $0xe0] sm:$0xff] }
  0x3e   :  { %424 = vmatpush.msra.mxu0 %v199_v44  ;;  %447 = vmatpush.msra.mxu1 %v231_v45  ;;  %v223_v61 = vld [vmem:[%s2584_s3 + $0x118] sm:$0xff]  ;;  %v189_v0 = vld [vmem:[%s2584_s3 + $0x8] sm:$0xff] }
  0x3f   :  { %470 = vmatpush.msra.mxu2 %v263_v58  ;;  %493 = vmatpush.msra.mxu3 %v295_v59  ;;  %v221_v1 = vld [vmem:[%s2584_s3 + $0x108] sm:$0xff]  ;;  %v259_v2 = vld [vmem:[%s2584_s3 + $0x238] sm:$0xff]  ;;  %v536_v58 = vld [vmem:[%s2586_s5 + $0xd0] sm:$0xff] }
  0x40   :  { %425 = vmatpush.msra.mxu0 %v197_v48  ;;  %448 = vmatpush.msra.mxu1 %v229_v49  ;;  %v291_v3 = vld [vmem:[%s2584_s3 + $0x338] sm:$0xff]  ;;  %v257_v4 = vld [vmem:[%s2584_s3 + $0x228] sm:$0xff]  ;;  %v516_v49 = vld [vmem:[%s2586_s5 + $0x30] sm:$0xff] }
  0x41   :  { %471 = vmatpush.msra.mxu2 %v261_v62  ;;  %494 = vmatpush.msra.mxu3 %v293_v63  ;;  %v289_v5 = vld [vmem:[%s2584_s3 + $0x328] sm:$0xff]  ;;  %v255_v6 = vld [vmem:[%s2584_s3 + $0x218] sm:$0xff]  ;;  %v534_v62 = vld [vmem:[%s2586_s5 + $0xc0] sm:$0xff] }
  0x42   :  { %426 = vmatpush.msra.mxu0 %v195_v52  ;;  %449 = vmatpush.msra.mxu1 %v227_v53  ;;  %v287_v7 = vld [vmem:[%s2584_s3 + $0x318] sm:$0xff]  ;;  %v253_v8 = vld [vmem:[%s2584_s3 + $0x208] sm:$0xff]  ;;  %v514_v53 = vld [vmem:[%s2586_s5 + $0x20] sm:$0xff] }
  0x43   :  { %472 = vmatpush.msra.mxu2 %v259_v2  ;;  %495 = vmatpush.msra.mxu3 %v291_v3  ;;  %v285_v9 = vld [vmem:[%s2584_s3 + $0x308] sm:$0xff]  ;;  %v525_v21 = vld [vmem:[%s2586_s5 + $0x78] sm:$0xff]  ;;  %v530_v2 = vld [vmem:[%s2586_s5 + $0xa0] sm:$0xff] }
  0x44   :  { %427 = vmatpush.msra.mxu0 %v193_v56  ;;  %450 = vmatpush.msra.mxu1 %v225_v57  ;;  %v523_v25 = vld [vmem:[%s2586_s5 + $0x68] sm:$0xff]  ;;  %v521_v37 = vld [vmem:[%s2586_s5 + $0x58] sm:$0xff]  ;;  %v512_v57 = vld [vmem:[%s2586_s5 + $0x10] sm:$0xff] }
  0x45   :  { %473 = vmatpush.msra.mxu2 %v257_v4  ;;  %496 = vmatpush.msra.mxu3 %v289_v5  ;;  %v519_v45 = vld [vmem:[%s2586_s5 + $0x48] sm:$0xff]  ;;  %v517_v47 = vld [vmem:[%s2586_s5 + $0x38] sm:$0xff]  ;;  %v528_v4 = vld [vmem:[%s2586_s5 + $0x90] sm:$0xff] }
  0x46   :  { %428 = vmatpush.msra.mxu0 %v191_v60  ;;  %451 = vmatpush.msra.mxu1 %v223_v61  ;;  %v541_v48 = vld [vmem:[%s2586_s5 + $0xf8] sm:$0xff]  ;;  %v515_v51 = vld [vmem:[%s2586_s5 + $0x28] sm:$0xff]  ;;  %v510_v61 = vld [vmem:[%s2586_s5] sm:$0xff] }
  0x47   :  { %474 = vmatpush.msra.mxu2 %v255_v6  ;;  %497 = vmatpush.msra.mxu3 %v287_v7  ;;  %v539_v52 = vld [vmem:[%s2586_s5 + $0xe8] sm:$0xff]  ;;  %v513_v55 = vld [vmem:[%s2586_s5 + $0x18] sm:$0xff]  ;;  %v316_v5 = vld [vmem:[%s2585_s4] sm:$0x3]  ;;  %s1193_s4 = sshll.u32 %s1285_s13, 4  ;;  %s1194_s4 = int_to_ptr.vmem [resolvable:$true] %s1193_s4 }
  0x48   :  { %429 = vmatpush.msra.mxu0 %v189_v0  ;;  %452 = vmatpush.msra.mxu1 %v221_v1  ;;  %v537_v56 = vld [vmem:[%s2586_s5 + $0xd8] sm:$0xff]  ;;  %v511_v59 = vld [vmem:[%s2586_s5 + $0x8] sm:$0xff]  ;;  %v532_v0 = vld [vmem:[%s2586_s5 + $0xb0] sm:$0xff] }
  0x49   :  { %475 = vmatpush.msra.mxu2 %v253_v8  ;;  %498 = vmatpush.msra.mxu3 %v285_v9  ;;  %v535_v60 = vld [vmem:[%s2586_s5 + $0xc8] sm:$0xff]  ;;  %v533_v63 = vld [vmem:[%s2586_s5 + $0xb8] sm:$0xff]  ;;  %v318_v8 = vperm.slane %v316_v5, 0  ;;  %v526_v9 = vld [vmem:[%s2586_s5 + $0x80] sm:$0xff] }
  0x4a   :  { %v531_v1 = vld [vmem:[%s2586_s5 + $0xa8] sm:$0xff]  ;;  %v529_v3 = vld [vmem:[%s2586_s5 + $0x98] sm:$0xff] }
  0x4b   :  { %v527_v7 = vld [vmem:[%s2586_s5 + $0x88] sm:$0xff] }
  0x83   :  { %v105_v13 = vpop.f32.mrf.mxu0  ;;  %v128_v14 = vpop.f32.mrf.mxu1 }
  0x84   :  { %v106_v15 = vadd.f32 %v105_v13, %v60_v11  ;;  %v129_v16 = vadd.f32 %v128_v14, %v61_v12  ;;  %v626_v14 = vld [vmem:[%s2588_s7 + $0xf0] sm:$0xff] }
  0x86   :  { %v180_v17 = vmax.f32 %v106_v15, 0.0  ;;  %v181_v18 = vmax.f32 %v129_v16, 0.0  ;;  %v627_v15 = vld [vmem:[%s2588_s7 + $0xf8] sm:$0xff]  ;;  %v624_v16 = vld [vmem:[%s2588_s7 + $0xe0] sm:$0xff] }
  0x88   :  { %338 = vmatmul.f32.vlgmr.msrb.gmra.mxu0 %v180_v17  ;;  %361 = vmatmul.f32.vlgmr.msrb.gmra.mxu1 %v181_v18 }
  0x89   :  { %546 = vmatpush.msrb.mxu0 %v525_v21  ;;  %569 = vmatpush.msrb.mxu1 %v541_v48 }
  0x8a   :  { %v151_v23 = vpop.f32.mrf.mxu2  ;;  %v174_v24 = vpop.f32.mrf.mxu3 }
  0x8b   :  { %v152_v26 = vadd.f32 %v151_v23, %v62_v19  ;;  %v175_v27 = vadd.f32 %v174_v24, %v63_v20  ;;  %v108_v28 = vpop.f32.mrf.mxu0  ;;  %v131_v29 = vpop.f32.mrf.mxu1  ;;  %547 = vmatpush.msrb.mxu0 %v524_v22  ;;  %570 = vmatpush.msrb.mxu1 %v540_v50  ;;  %v622_v22 = vld [vmem:[%s2588_s7 + $0xd0] sm:$0xff]  ;;  %v623_v23 = vld [vmem:[%s2588_s7 + $0xd8] sm:$0xff] }
  0x8c   :  { %v109_v30 = vadd.f32 %v108_v28, %v60_v11  ;;  %v132_v31 = vadd.f32 %v131_v29, %v61_v12 }
  0x8d   :  { %v182_v32 = vmax.f32 %v152_v26, 0.0  ;;  %v183_v33 = vmax.f32 %v175_v27, 0.0  ;;  %548 = vmatpush.msrb.mxu0 %v523_v25  ;;  %571 = vmatpush.msrb.mxu1 %v539_v52  ;;  %v620_v26 = vld [vmem:[%s2588_s7 + $0xc0] sm:$0xff]  ;;  %v621_v27 = vld [vmem:[%s2588_s7 + $0xc8] sm:$0xff] }
  0x8e   :  { %v184_v34 = vmax.f32 %v109_v30, 0.0  ;;  %v185_v35 = vmax.f32 %v132_v31, 0.0  ;;  %v618_v31 = vld [vmem:[%s2588_s7 + $0xb0] sm:$0xff] }
  0x8f   :  { %384 = vmatmul.f32.vlgmr.msrb.gmra.mxu2 %v182_v32  ;;  %407 = vmatmul.f32.vlgmr.msrb.gmra.mxu3 %v183_v33 }
  0x90   :  { %341 = vmatmul.f32.gmra.mxu0 %v184_v34  ;;  %364 = vmatmul.f32.gmra.mxu1 %v185_v35 }
  0x91   :  { %549 = vmatpush.msrb.mxu0 %v522_v36  ;;  %572 = vmatpush.msrb.mxu1 %v538_v54 }
  0x92   :  { %v154_v38 = vpop.f32.mrf.mxu2  ;;  %v177_v39 = vpop.f32.mrf.mxu3  ;;  %634 = vmatpush.msrb.mxu2 %v626_v14  ;;  %657 = vmatpush.msrb.mxu3 %v627_v15  ;;  %v744_v14 = vld [vmem:[%s2590_s9 + $0x1e0] sm:$0xff] }
  0x93   :  { %v155_v41 = vadd.f32 %v154_v38, %v62_v19  ;;  %v178_v42 = vadd.f32 %v177_v39, %v63_v20  ;;  %550 = vmatpush.msrb.mxu0 %v521_v37  ;;  %573 = vmatpush.msrb.mxu1 %v537_v56  ;;  %v625_v19 = vld [vmem:[%s2588_s7 + $0xe8] sm:$0xff]  ;;  %v616_v56 = vld [vmem:[%s2588_s7 + $0xa0] sm:$0xff] }
  0x94   :  { %635 = vmatpush.msrb.mxu2 %v624_v16  ;;  %658 = vmatpush.msrb.mxu3 %v625_v19  ;;  %v808_v15 = vld [vmem:[%s2590_s9 + $0x3e0] sm:$0xff]  ;;  %v745_v16 = vld [vmem:[%s2590_s9 + $0x1e8] sm:$0xff] }
  0x95   :  { %v186_v43 = vmax.f32 %v155_v41, 0.0  ;;  %v187_v44 = vmax.f32 %v178_v42, 0.0  ;;  %551 = vmatpush.msrb.mxu0 %v520_v40  ;;  %574 = vmatpush.msrb.mxu1 %v536_v58  ;;  %v614_v58 = vld [vmem:[%s2588_s7 + $0x90] sm:$0xff]  ;;  %v804_v19 = vld [vmem:[%s2590_s9 + $0x3c0] sm:$0xff] }
  0x96   :  { %636 = vmatpush.msrb.mxu2 %v622_v22  ;;  %659 = vmatpush.msrb.mxu3 %v623_v23  ;;  %v736_v22 = vld [vmem:[%s2590_s9 + $0x1a0] sm:$0xff] }
  0x97   :  { %387 = vmatmul.f32.gmra.mxu2 %v186_v43  ;;  %410 = vmatmul.f32.gmra.mxu3 %v187_v44  ;;  %v800_v23 = vld [vmem:[%s2590_s9 + $0x3a0] sm:$0xff] }
  0x98   :  { %430 = vmatmul.f32.vlgmr.msra.gmra.mxu0 %v180_v17  ;;  %453 = vmatmul.f32.vlgmr.msra.gmra.mxu1 %v181_v18 }
  0x99   :  { %552 = vmatpush.msrb.mxu0 %v519_v45  ;;  %575 = vmatpush.msrb.mxu1 %v535_v60  ;;  %v612_v60 = vld [vmem:[%s2588_s7 + $0x80] sm:$0xff] }
  0x9a   :  { %637 = vmatpush.msrb.mxu2 %v620_v26  ;;  %660 = vmatpush.msrb.mxu3 %v621_v27  ;;  %v732_v26 = vld [vmem:[%s2590_s9 + $0x180] sm:$0xff] }
  0x9b   :  { %553 = vmatpush.msrb.mxu0 %v518_v46  ;;  %576 = vmatpush.msrb.mxu1 %v534_v62  ;;  %v610_v62 = vld [vmem:[%s2588_s7 + $0x70] sm:$0xff]  ;;  %v796_v27 = vld [vmem:[%s2590_s9 + $0x380] sm:$0xff] }
  0x9c   :  { %638 = vmatpush.msrb.mxu2 %v618_v31  ;;  %v792_v31 = vld [vmem:[%s2590_s9 + $0x360] sm:$0xff] }
  0x9d   :  { %554 = vmatpush.msrb.mxu0 %v517_v47  ;;  %577 = vmatpush.msrb.mxu1 %v533_v63  ;;  %v611_v63 = vld [vmem:[%s2588_s7 + $0x78] sm:$0xff] }
  0x9e   :  { %639 = vmatpush.msrb.mxu2 %v616_v56 }
  0x9f   :  { %476 = vmatmul.f32.vlgmr.msra.gmra.mxu2 %v182_v32  ;;  %499 = vmatmul.f32.vlgmr.msra.gmra.mxu3 %v183_v33  ;;  %v619_v32 = vld [vmem:[%s2588_s7 + $0xb8] sm:$0xff]  ;;  %v319_v33 = vperm.slane %v316_v5, 1  ;;  %v605_v5 = vld [vmem:[%s2588_s7 + $0x48] sm:$0xff] }
  0xa0   :  { %433 = vmatmul.f32.gmra.mxu0 %v184_v34  ;;  %456 = vmatmul.f32.gmra.mxu1 %v185_v35 }
  0xa1   :  { %555 = vmatpush.msrb.mxu0 %v516_v49  ;;  %578 = vmatpush.msrb.mxu1 %v532_v0  ;;  %v608_v0 = vld [vmem:[%s2588_s7 + $0x60] sm:$0xff] }
  0xa2   :  { %661 = vmatpush.msrb.mxu3 %v619_v32  ;;  %640 = vmatpush.msrb.mxu2 %v614_v58  ;;  %v729_v32 = vld [vmem:[%s2590_s9 + $0x168] sm:$0xff]  ;;  %v768_v58 = vld [vmem:[%s2590_s9 + $0x2a0] sm:$0xff] }
  0xa3   :  { %556 = vmatpush.msrb.mxu0 %v515_v51  ;;  %579 = vmatpush.msrb.mxu1 %v531_v1  ;;  %v609_v1 = vld [vmem:[%s2588_s7 + $0x68] sm:$0xff] }
  0xa4   :  { %641 = vmatpush.msrb.mxu2 %v612_v60  ;;  %v705_v60 = vld [vmem:[%s2590_s9 + $0xa8] sm:$0xff] }
  0xa5   :  { %557 = vmatpush.msrb.mxu0 %v514_v53  ;;  %580 = vmatpush.msrb.mxu1 %v530_v2  ;;  %v606_v2 = vld [vmem:[%s2588_s7 + $0x50] sm:$0xff] }
  0xa6   :  { %642 = vmatpush.msrb.mxu2 %v610_v62 }
  0xa7   :  { %479 = vmatmul.f32.gmra.mxu2 %v186_v43  ;;  %502 = vmatmul.f32.gmra.mxu3 %v187_v44 }
  0xa8   :  { %558 = vmatpush.msrb.mxu0 %v513_v55  ;;  %581 = vmatpush.msrb.mxu1 %v529_v3  ;;  %v607_v3 = vld [vmem:[%s2588_s7 + $0x58] sm:$0xff] }
  0xa9   :  { %643 = vmatpush.msrb.mxu2 %v608_v0  ;;  %v764_v0 = vld [vmem:[%s2590_s9 + $0x280] sm:$0xff] }
  0xaa   :  { %559 = vmatpush.msrb.mxu0 %v512_v57  ;;  %582 = vmatpush.msrb.mxu1 %v528_v4  ;;  %v617_v57 = vld [vmem:[%s2588_s7 + $0xa8] sm:$0xff]  ;;  %v604_v4 = vld [vmem:[%s2588_s7 + $0x40] sm:$0xff] }
  0xab   :  { %662 = vmatpush.msrb.mxu3 %v617_v57  ;;  %644 = vmatpush.msrb.mxu2 %v606_v2  ;;  %v704_v57 = vld [vmem:[%s2590_s9 + $0xa0] sm:$0xff]  ;;  %v701_v2 = vld [vmem:[%s2590_s9 + $0x88] sm:$0xff] }
  0xac   :  { %560 = vmatpush.msrb.mxu0 %v511_v59  ;;  %583 = vmatpush.msrb.mxu1 %v527_v7  ;;  %v615_v59 = vld [vmem:[%s2588_s7 + $0x98] sm:$0xff] }
  0xad   :  { %663 = vmatpush.msrb.mxu3 %v615_v59  ;;  %v603_v7 = vld [vmem:[%s2588_s7 + $0x38] sm:$0xff]  ;;  %645 = vmatpush.msrb.mxu2 %v604_v4 }
  0xae   :  { %561 = vmatpush.msrb.mxu0 %v510_v61  ;;  %584 = vmatpush.msrb.mxu1 %v526_v9  ;;  %v613_v61 = vld [vmem:[%s2588_s7 + $0x88] sm:$0xff] }
  0xaf   :  { %664 = vmatpush.msrb.mxu3 %v613_v61  ;;  %v601_v9 = vld [vmem:[%s2588_s7 + $0x28] sm:$0xff] }
  0xb0   :  { %822 = vmatpush.msra.mxu0 %v744_v14  ;;  %845 = vmatpush.msra.mxu1 %v808_v15  ;;  %v769_v61 = vld [vmem:[%s2590_s9 + $0x2a8] sm:$0xff]  ;;  %v688_v15 = vld [vmem:[%s2590_s9 + $0x20] sm:$0xff] }
  0xb1   :  { %665 = vmatpush.msrb.mxu3 %v611_v63  ;;  %v700_v63 = vld [vmem:[%s2590_s9 + $0x80] sm:$0xff] }
  0xb2   :  { %846 = vmatpush.msra.mxu1 %v804_v19  ;;  %v753_v19 = vld [vmem:[%s2590_s9 + $0x228] sm:$0xff] }
  0xb3   :  { %666 = vmatpush.msrb.mxu3 %v609_v1 }
  0xb4   :  { %847 = vmatpush.msra.mxu1 %v800_v23  ;;  %v685_v23 = vld [vmem:[%s2590_s9 + $0x8] sm:$0xff] }
  0xb5   :  { %667 = vmatpush.msrb.mxu3 %v607_v3  ;;  %v765_v3 = vld [vmem:[%s2590_s9 + $0x288] sm:$0xff] }
  0xb6   :  { %848 = vmatpush.msra.mxu1 %v796_v27  ;;  %v747_v27 = vld [vmem:[%s2590_s9 + $0x1f8] sm:$0xff] }
  0xb7   :  { %668 = vmatpush.msrb.mxu3 %v605_v5  ;;  %v696_v5 = vld [vmem:[%s2590_s9 + $0x60] sm:$0xff] }
  0xb8   :  { %849 = vmatpush.msra.mxu1 %v792_v31  ;;  %v743_v31 = vld [vmem:[%s2590_s9 + $0x1d8] sm:$0xff] }
  0xb9   :  { %669 = vmatpush.msrb.mxu3 %v603_v7  ;;  %v697_v7 = vld [vmem:[%s2590_s9 + $0x68] sm:$0xff] }
  0xbb   :  { %670 = vmatpush.msrb.mxu3 %v601_v9  ;;  %v692_v9 = vld [vmem:[%s2590_s9 + $0x40] sm:$0xff] }
 0x105   :  { %v339_v6 = vpop.f32.mrf.mxu0  ;;  %v362_v10 = vpop.f32.mrf.mxu1 }
 0x106   :  { %v340_v11 = vadd.f32 %v339_v6, %v318_v8  ;;  %v602_v6 = vld [vmem:[%s2588_s7 + $0x30] sm:$0xff] }
 0x107   :  { %646 = vmatpush.msrb.mxu2 %v602_v6  ;;  %v760_v6 = vld [vmem:[%s2590_s9 + $0x260] sm:$0xff] }
 0x108   :  { %v363_v13 = vadd.f32 %v362_v10, %v340_v11  ;;  %v598_v10 = vld [vmem:[%s2588_s7 + $0x10] sm:$0xff]  ;;  %v599_v11 = vld [vmem:[%s2588_s7 + $0x18] sm:$0xff] }
 0x109   :  { %671 = vmatpush.msrb.mxu3 %v599_v11 }
 0x10d   :  { %v342_v12 = vpop.f32.mrf.mxu0  ;;  %v365_v24 = vpop.f32.mrf.mxu1 }
 0x10e   :  { %v343_v20 = vadd.f32 %v342_v12, %v318_v8  ;;  %v600_v8 = vld [vmem:[%s2588_s7 + $0x20] sm:$0xff] }
 0x10f   :  { %647 = vmatpush.msrb.mxu2 %v600_v8  ;;  %v596_v12 = vld [vmem:[%s2588_s7] sm:$0xff]  ;;  %v761_v8 = vld [vmem:[%s2590_s9 + $0x268] sm:$0xff] }
 0x110   :  { %v366_v28 = vadd.f32 %v365_v24, %v343_v20  ;;  %v741_v20 = vld [vmem:[%s2590_s9 + $0x1c8] sm:$0xff] }
 0x111   :  { %648 = vmatpush.msrb.mxu2 %v598_v10  ;;  %v737_v24 = vld [vmem:[%s2590_s9 + $0x1a8] sm:$0xff]  ;;  %v756_v10 = vld [vmem:[%s2590_s9 + $0x240] sm:$0xff] }
 0x112   :  { %v385_v17 = vpop.f32.mrf.mxu2  ;;  %v408_v18 = vpop.f32.mrf.mxu3 }
 0x113   :  { %v386_v21 = vadd.f32 %v385_v17, %v363_v13  ;;  %v597_v13 = vld [vmem:[%s2588_s7 + $0x8] sm:$0xff]  ;;  %649 = vmatpush.msrb.mxu2 %v596_v12 }
 0x114   :  { %672 = vmatpush.msrb.mxu3 %v597_v13  ;;  %v809_v17 = vld [vmem:[%s2590_s9 + $0x3e8] sm:$0xff] }
 0x115   :  { %v409_v25 = vadd.f32 %v408_v18, %v386_v21  ;;  %v431_v30 = vpop.f32.mrf.mxu0  ;;  %v454_v39 = vpop.f32.mrf.mxu1  ;;  %v740_v18 = vld [vmem:[%s2590_s9 + $0x1c0] sm:$0xff]  ;;  %868 = vmatpush.msra.mxu2 %v745_v16  ;;  %v805_v21 = vld [vmem:[%s2590_s9 + $0x3c8] sm:$0xff] }
 0x116   :  { %v432_v37 = vadd.f32 %v431_v30, %v319_v33  ;;  %891 = vmatpush.msra.mxu3 %v809_v17  ;;  %823 = vmatpush.msra.mxu0 %v740_v18  ;;  %v728_v30 = vld [vmem:[%s2590_s9 + $0x160] sm:$0xff]  ;;  %v693_v12 = vld [vmem:[%s2590_s9 + $0x48] sm:$0xff] }
 0x117   :  { %v506_v29 = vmax.f32 %v409_v25, 0.0  ;;  %v801_v25 = vld [vmem:[%s2590_s9 + $0x3a8] sm:$0xff]  ;;  %869 = vmatpush.msra.mxu2 %v741_v20  ;;  %v752_v16 = vld [vmem:[%s2590_s9 + $0x220] sm:$0xff] }
 0x118   :  { %v455_v41 = vadd.f32 %v454_v39, %v432_v37  ;;  %892 = vmatpush.msra.mxu3 %v805_v21  ;;  %824 = vmatpush.msra.mxu0 %v736_v22  ;;  %v789_v37 = vld [vmem:[%s2590_s9 + $0x348] sm:$0xff]  ;;  %v784_v39 = vld [vmem:[%s2590_s9 + $0x320] sm:$0xff] }
 0x119   :  { %562 = vmatmul.f32.vlgmr.msrb.gmra.mxu0 %v506_v29  ;;  %v797_v29 = vld [vmem:[%s2590_s9 + $0x388] sm:$0xff]  ;;  %870 = vmatpush.msra.mxu2 %v737_v24  ;;  %v684_v21 = vld [vmem:[%s2590_s9] sm:$0xff] }
 0x11a   :  { %v388_v34 = vpop.f32.mrf.mxu2  ;;  %v411_v35 = vpop.f32.mrf.mxu3  ;;  %893 = vmatpush.msra.mxu3 %v801_v25  ;;  %825 = vmatpush.msra.mxu0 %v732_v26  ;;  %v757_v13 = vld [vmem:[%s2590_s9 + $0x248] sm:$0xff]  ;;  %v748_v22 = vld [vmem:[%s2590_s9 + $0x200] sm:$0xff]  ;;  %v746_v25 = vld [vmem:[%s2590_s9 + $0x1f0] sm:$0xff] }
 0x11b   :  { %v389_v36 = vadd.f32 %v388_v34, %v366_v28  ;;  %v733_v28 = vld [vmem:[%s2590_s9 + $0x188] sm:$0xff]  ;;  %v724_v34 = vld [vmem:[%s2590_s9 + $0x140] sm:$0xff]  ;;  %v810_v26 = vld [vmem:[%s2590_s9 + $0x3f0] sm:$0xff] }
 0x11c   :  { %871 = vmatpush.msra.mxu2 %v733_v28  ;;  %894 = vmatpush.msra.mxu3 %v797_v29  ;;  %v689_v18 = vld [vmem:[%s2590_s9 + $0x28] sm:$0xff]  ;;  %v811_v28 = vld [vmem:[%s2590_s9 + $0x3f8] sm:$0xff]  ;;  %v742_v29 = vld [vmem:[%s2590_s9 + $0x1d0] sm:$0xff] }
 0x11d   :  { %v412_v38 = vadd.f32 %v411_v35, %v389_v36  ;;  %v434_v42 = vpop.f32.mrf.mxu0  ;;  %v457_v49 = vpop.f32.mrf.mxu1  ;;  %v788_v35 = vld [vmem:[%s2590_s9 + $0x340] sm:$0xff]  ;;  %826 = vmatpush.msra.mxu0 %v728_v30  ;;  %v725_v36 = vld [vmem:[%s2590_s9 + $0x148] sm:$0xff]  ;;  %v806_v30 = vld [vmem:[%s2590_s9 + $0x3d0] sm:$0xff] }
 0x11e   :  { %v435_v46 = vadd.f32 %v434_v42, %v319_v33  ;;  %v793_v33 = vld [vmem:[%s2590_s9 + $0x368] sm:$0xff]  ;;  %872 = vmatpush.msra.mxu2 %v729_v32  ;;  %850 = vmatpush.msra.mxu1 %v788_v35  ;;  %v716_v42 = vld [vmem:[%s2590_s9 + $0x100] sm:$0xff]  ;;  %v807_v32 = vld [vmem:[%s2590_s9 + $0x3d8] sm:$0xff] }
 0x11f   :  { %v508_v40 = vmax.f32 %v412_v38, 0.0  ;;  %895 = vmatpush.msra.mxu3 %v793_v33  ;;  %v720_v38 = vld [vmem:[%s2590_s9 + $0x120] sm:$0xff]  ;;  %827 = vmatpush.msra.mxu0 %v724_v34  ;;  %v749_v24 = vld [vmem:[%s2590_s9 + $0x208] sm:$0xff]  ;;  %v738_v33 = vld [vmem:[%s2590_s9 + $0x1b0] sm:$0xff] }
 0x120   :  { %v458_v50 = vadd.f32 %v457_v49, %v435_v46  ;;  %873 = vmatpush.msra.mxu2 %v725_v36  ;;  %851 = vmatpush.msra.mxu1 %v784_v39  ;;  %v781_v46 = vld [vmem:[%s2590_s9 + $0x308] sm:$0xff]  ;;  %v776_v49 = vld [vmem:[%s2590_s9 + $0x2e0] sm:$0xff]  ;;  %v802_v34 = vld [vmem:[%s2590_s9 + $0x3b0] sm:$0xff] }
 0x121   :  { %565 = vmatmul.f32.gmra.mxu0 %v508_v40  ;;  %v721_v40 = vld [vmem:[%s2590_s9 + $0x128] sm:$0xff]  ;;  %896 = vmatpush.msra.mxu3 %v789_v37  ;;  %v739_v35 = vld [vmem:[%s2590_s9 + $0x1b8] sm:$0xff]  ;;  %v734_v37 = vld [vmem:[%s2590_s9 + $0x190] sm:$0xff] }
 0x122   :  { %v477_v43 = vpop.f32.mrf.mxu2  ;;  %v500_v44 = vpop.f32.mrf.mxu3  ;;  %828 = vmatpush.msra.mxu0 %v720_v38  ;;  %874 = vmatpush.msra.mxu2 %v721_v40  ;;  %v803_v36 = vld [vmem:[%s2590_s9 + $0x3b8] sm:$0xff]  ;;  %v798_v38 = vld [vmem:[%s2590_s9 + $0x390] sm:$0xff] }
 0x123   :  { %v478_v45 = vadd.f32 %v477_v43, %v455_v41  ;;  %v785_v41 = vld [vmem:[%s2590_s9 + $0x328] sm:$0xff]  ;;  %v780_v43 = vld [vmem:[%s2590_s9 + $0x300] sm:$0xff]  ;;  %v735_v39 = vld [vmem:[%s2590_s9 + $0x198] sm:$0xff] }
 0x124   :  { %897 = vmatpush.msra.mxu3 %v785_v41  ;;  %829 = vmatpush.msra.mxu0 %v716_v42  ;;  %v799_v40 = vld [vmem:[%s2590_s9 + $0x398] sm:$0xff]  ;;  %v730_v41 = vld [vmem:[%s2590_s9 + $0x170] sm:$0xff] }
 0x125   :  { %v501_v47 = vadd.f32 %v500_v44, %v478_v45  ;;  %v717_v45 = vld [vmem:[%s2590_s9 + $0x108] sm:$0xff]  ;;  %852 = vmatpush.msra.mxu1 %v780_v43  ;;  %v794_v42 = vld [vmem:[%s2590_s9 + $0x370] sm:$0xff]  ;;  %v731_v43 = vld [vmem:[%s2590_s9 + $0x178] sm:$0xff] }
 0x126   :  { %875 = vmatpush.msra.mxu2 %v717_v45  ;;  %898 = vmatpush.msra.mxu3 %v781_v46  ;;  %v726_v45 = vld [vmem:[%s2590_s9 + $0x150] sm:$0xff] }
 0x127   :  { %v507_v48 = vmax.f32 %v501_v47, 0.0  ;;  %v1228_v47 = vld [vmem:[%s2587_s6] ss:$0 sm:$0xff]  ;;  %853 = vmatpush.msra.mxu1 %v776_v49  ;;  %v790_v46 = vld [vmem:[%s2590_s9 + $0x350] sm:$0xff] }
 0x128   :  { %v722_v49 = vld [vmem:[%s2590_s9 + $0x130] sm:$0xff] }
 0x129   :  { %585 = vmatmul.f32.vlgmr.msrb.gmra.mxu1 %v507_v48  ;;  %v712_v48 = vld [vmem:[%s2590_s9 + $0xe0] sm:$0xff] }
 0x12a   :  { %v480_v51 = vpop.f32.mrf.mxu2  ;;  %v503_v53 = vpop.f32.mrf.mxu3  ;;  %830 = vmatpush.msra.mxu0 %v712_v48  ;;  %v791_v48 = vld [vmem:[%s2590_s9 + $0x358] sm:$0xff] }
 0x12b   :  { %v481_v52 = vadd.f32 %v480_v51, %v458_v50  ;;  %v713_v50 = vld [vmem:[%s2590_s9 + $0xe8] sm:$0xff] }
 0x12c   :  { %v777_v51 = vld [vmem:[%s2590_s9 + $0x2e8] sm:$0xff]  ;;  %876 = vmatpush.msra.mxu2 %v713_v50  ;;  %v786_v50 = vld [vmem:[%s2590_s9 + $0x330] sm:$0xff] }
 0x12d   :  { %v504_v54 = vadd.f32 %v503_v53, %v481_v52  ;;  %v708_v52 = vld [vmem:[%s2590_s9 + $0xc0] sm:$0xff]  ;;  %899 = vmatpush.msra.mxu3 %v777_v51  ;;  %v723_v51 = vld [vmem:[%s2590_s9 + $0x138] sm:$0xff] }
 0x12e   :  { %v772_v53 = vld [vmem:[%s2590_s9 + $0x2c0] sm:$0xff]  ;;  %831 = vmatpush.msra.mxu0 %v708_v52  ;;  %v787_v52 = vld [vmem:[%s2590_s9 + $0x338] sm:$0xff] }
 0x12f   :  { %v509_v55 = vmax.f32 %v504_v54, 0.0  ;;  %v709_v54 = vld [vmem:[%s2590_s9 + $0xc8] sm:$0xff]  ;;  %854 = vmatpush.msra.mxu1 %v772_v53  ;;  %v718_v53 = vld [vmem:[%s2590_s9 + $0x110] sm:$0xff] }
 0x130   :  { %877 = vmatpush.msra.mxu2 %v709_v54  ;;  %832 = vmatpush.msra.mxu0 %v704_v57  ;;  %v782_v54 = vld [vmem:[%s2590_s9 + $0x310] sm:$0xff] }
 0x131   :  { %588 = vmatmul.f32.gmra.mxu1 %v509_v55  ;;  %v773_v55 = vld [vmem:[%s2590_s9 + $0x2c8] sm:$0xff]  ;;  %v714_v57 = vld [vmem:[%s2590_s9 + $0xf0] sm:$0xff] }
 0x132   :  { %900 = vmatpush.msra.mxu3 %v773_v55  ;;  %855 = vmatpush.msra.mxu1 %v768_v58  ;;  %v719_v55 = vld [vmem:[%s2590_s9 + $0x118] sm:$0xff]  ;;  %v778_v58 = vld [vmem:[%s2590_s9 + $0x2f0] sm:$0xff] }
 0x133   :  { %878 = vmatpush.msra.mxu2 %v705_v60  ;;  %833 = vmatpush.msra.mxu0 %v700_v63  ;;  %v779_v60 = vld [vmem:[%s2590_s9 + $0x2f8] sm:$0xff] }
 0x134   :  { %901 = vmatpush.msra.mxu3 %v769_v61  ;;  %856 = vmatpush.msra.mxu1 %v764_v0  ;;  %v710_v61 = vld [vmem:[%s2590_s9 + $0xd0] sm:$0xff]  ;;  %v711_v63 = vld [vmem:[%s2590_s9 + $0xd8] sm:$0xff] }
 0x135   :  { %879 = vmatpush.msra.mxu2 %v701_v2  ;;  %834 = vmatpush.msra.mxu0 %v696_v5  ;;  %v775_v0 = vld [vmem:[%s2590_s9 + $0x2d8] sm:$0xff]  ;;  %v770_v2 = vld [vmem:[%s2590_s9 + $0x2b0] sm:$0xff] }
 0x136   :  { %902 = vmatpush.msra.mxu3 %v765_v3  ;;  %857 = vmatpush.msra.mxu1 %v760_v6  ;;  %v707_v3 = vld [vmem:[%s2590_s9 + $0xb8] sm:$0xff]  ;;  %v702_v5 = vld [vmem:[%s2590_s9 + $0x90] sm:$0xff] }
 0x137   :  { %880 = vmatpush.msra.mxu2 %v697_v7  ;;  %835 = vmatpush.msra.mxu0 %v692_v9  ;;  %v766_v6 = vld [vmem:[%s2590_s9 + $0x290] sm:$0xff]  ;;  %v703_v7 = vld [vmem:[%s2590_s9 + $0x98] sm:$0xff] }
 0x138   :  { %903 = vmatpush.msra.mxu3 %v761_v8  ;;  %858 = vmatpush.msra.mxu1 %v756_v10  ;;  %v767_v8 = vld [vmem:[%s2590_s9 + $0x298] sm:$0xff]  ;;  %v698_v9 = vld [vmem:[%s2590_s9 + $0x70] sm:$0xff] }
 0x139   :  { %881 = vmatpush.msra.mxu2 %v693_v12  ;;  %836 = vmatpush.msra.mxu0 %v688_v15  ;;  %v762_v10 = vld [vmem:[%s2590_s9 + $0x270] sm:$0xff]  ;;  %v763_v12 = vld [vmem:[%s2590_s9 + $0x278] sm:$0xff] }
 0x13a   :  { %904 = vmatpush.msra.mxu3 %v757_v13  ;;  %859 = vmatpush.msra.mxu1 %v752_v16  ;;  %v694_v13 = vld [vmem:[%s2590_s9 + $0x50] sm:$0xff]  ;;  %v695_v15 = vld [vmem:[%s2590_s9 + $0x58] sm:$0xff] }
 0x13b   :  { %882 = vmatpush.msra.mxu2 %v689_v18  ;;  %837 = vmatpush.msra.mxu0 %v684_v21  ;;  %v759_v16 = vld [vmem:[%s2590_s9 + $0x258] sm:$0xff]  ;;  %v754_v18 = vld [vmem:[%s2590_s9 + $0x230] sm:$0xff] }
 0x13c   :  { %905 = vmatpush.msra.mxu3 %v753_v19  ;;  %860 = vmatpush.msra.mxu1 %v748_v22  ;;  %v691_v19 = vld [vmem:[%s2590_s9 + $0x38] sm:$0xff]  ;;  %v686_v21 = vld [vmem:[%s2590_s9 + $0x10] sm:$0xff] }
 0x13d   :  { %883 = vmatpush.msra.mxu2 %v685_v23  ;;  %914 = vmatpush.msrb.mxu0 %v746_v25  ;;  %v750_v22 = vld [vmem:[%s2590_s9 + $0x210] sm:$0xff]  ;;  %v687_v23 = vld [vmem:[%s2590_s9 + $0x18] sm:$0xff]  ;;  %v628_v25 = vld [vmem:[%s2589_s8] sm:$0x3] }
 0x13e   :  { %906 = vmatpush.msra.mxu3 %v749_v24  ;;  %937 = vmatpush.msrb.mxu1 %v810_v26  ;;  %v751_v24 = vld [vmem:[%s2590_s9 + $0x218] sm:$0xff]  ;;  %v630_v26 = vperm.slane %v628_v25, 0 }
 0x13f   :  { %915 = vmatpush.msrb.mxu0 %v742_v29 }
 0x140   :  { %938 = vmatpush.msrb.mxu1 %v806_v30 }
 0x141   :  { %916 = vmatpush.msrb.mxu0 %v738_v33 }
 0x142   :  { %939 = vmatpush.msrb.mxu1 %v802_v34  ;;  %v1029_v34 = vld [vmem:[%s2592_s11 + $0x78] sm:$0xff] }
 0x143   :  { %917 = vmatpush.msrb.mxu0 %v734_v37  ;;  %v1028_v37 = vld [vmem:[%s2592_s11 + $0x70] sm:$0xff] }
 0x144   :  { %940 = vmatpush.msrb.mxu1 %v798_v38  ;;  %v1044_v38 = vld [vmem:[%s2592_s11 + $0xf0] sm:$0xff] }
 0x145   :  { %918 = vmatpush.msrb.mxu0 %v730_v41 }
 0x146   :  { %941 = vmatpush.msrb.mxu1 %v794_v42 }
 0x147   :  { %919 = vmatpush.msrb.mxu0 %v726_v45 }
 0x148   :  { %942 = vmatpush.msrb.mxu1 %v790_v46 }
 0x149   :  { %920 = vmatpush.msrb.mxu0 %v722_v49 }
 0x14a   :  { %943 = vmatpush.msrb.mxu1 %v786_v50  ;;  %v1026_v50 = vld [vmem:[%s2592_s11 + $0x60] sm:$0xff] }
 0x14b   :  { %921 = vmatpush.msrb.mxu0 %v718_v53  ;;  %v1025_v53 = vld [vmem:[%s2592_s11 + $0x58] sm:$0xff] }
 0x14c   :  { %944 = vmatpush.msrb.mxu1 %v782_v54  ;;  %v1041_v54 = vld [vmem:[%s2592_s11 + $0xd8] sm:$0xff] }
 0x14d   :  { %922 = vmatpush.msrb.mxu0 %v714_v57  ;;  %v1023_v57 = vld [vmem:[%s2592_s11 + $0x48] sm:$0xff] }
 0x14e   :  { %945 = vmatpush.msrb.mxu1 %v778_v58  ;;  %v1039_v58 = vld [vmem:[%s2592_s11 + $0xc8] sm:$0xff] }
 0x14f   :  { %923 = vmatpush.msrb.mxu0 %v710_v61  ;;  %v1021_v61 = vld [vmem:[%s2592_s11 + $0x38] sm:$0xff] }
 0x196   :  { %v563_v44 = vpop.f32.mrf.mxu0 }
 0x197   :  { %v564_v56 = vadd.f32 %v1228_v47, %v563_v44  ;;  %v795_v44 = vld [vmem:[%s2590_s9 + $0x378] sm:$0xff] }
 0x19e   :  { %v566_v4 = vpop.f32.mrf.mxu0 }
 0x19f   :  { %v567_v11 = vadd.f32 %v1228_v47, %v566_v4  ;;  %v727_v47 = vld [vmem:[%s2590_s9 + $0x158] sm:$0xff] }
 0x1a0   :  { %v771_v4 = vld [vmem:[%s2590_s9 + $0x2b8] sm:$0xff] }
 0x1a6   :  { %v586_v59 = vpop.f32.mrf.mxu1 }
 0x1a7   :  { %v587_v62 = vadd.f32 %v586_v59, %v564_v56  ;;  %v783_v56 = vld [vmem:[%s2590_s9 + $0x318] sm:$0xff] }
 0x1a8   :  { %v715_v59 = vld [vmem:[%s2590_s9 + $0xf8] sm:$0xff] }
 0x1a9   :  { %v592_v1 = vmax.f32 %v587_v62, 0.0  ;;  %v774_v62 = vld [vmem:[%s2590_s9 + $0x2d0] sm:$0xff] }
 0x1aa   :  { %946 = vmatpush.msrb.mxu1 %v774_v62  ;;  %v1037_v62 = vld [vmem:[%s2592_s11 + $0xb8] sm:$0xff] }
 0x1ab   :  { %594 = vst [vmem:[#allocation2] sm:$0xff] %v592_v1  ;;  %650 = vmatmul.f32.vlgmr.msrb.gmra.mxu2 %v592_v1  ;;  %673 = vmatmul.f32.vlgmr.msrb.gmra.mxu3 %v592_v1  ;;  %v706_v1 = vld [vmem:[%s2590_s9 + $0xb0] sm:$0xff] }
 0x1ac   :  { %960 = vmatpush.msrb.mxu2 %v747_v27  ;;  %983 = vmatpush.msrb.mxu3 %v811_v28  ;;  %v631_v27 = vperm.slane %v628_v25, 1  ;;  %v1051_v25 = vld [vmem:[%s2592_s11 + $0x128] sm:$0xff] }
 0x1ad   :  { %924 = vmatpush.msrb.mxu0 %v706_v1  ;;  %947 = vmatpush.msrb.mxu1 %v770_v2  ;;  %v1018_v1 = vld [vmem:[%s2592_s11 + $0x20] sm:$0xff]  ;;  %v1017_v2 = vld [vmem:[%s2592_s11 + $0x18] sm:$0xff] }
 0x1ae   :  { %v589_v14 = vpop.f32.mrf.mxu1  ;;  %961 = vmatpush.msrb.mxu2 %v743_v31  ;;  %984 = vmatpush.msrb.mxu3 %v807_v32 }
 0x1af   :  { %v590_v17 = vadd.f32 %v589_v14, %v567_v11  ;;  %925 = vmatpush.msrb.mxu0 %v702_v5  ;;  %948 = vmatpush.msrb.mxu1 %v766_v6  ;;  %v699_v11 = vld [vmem:[%s2590_s9 + $0x78] sm:$0xff]  ;;  %v758_v14 = vld [vmem:[%s2590_s9 + $0x250] sm:$0xff] }
 0x1b0   :  { %962 = vmatpush.msrb.mxu2 %v739_v35  ;;  %985 = vmatpush.msrb.mxu3 %v803_v36  ;;  %v1045_v35 = vld [vmem:[%s2592_s11 + $0xf8] sm:$0xff]  ;;  %v1076_v5 = vld [vmem:[%s2592_s11 + $0x1f0] sm:$0xff] }
 0x1b1   :  { %v593_v20 = vmax.f32 %v590_v17, 0.0  ;;  %926 = vmatpush.msrb.mxu0 %v698_v9  ;;  %949 = vmatpush.msrb.mxu1 %v762_v10  ;;  %v690_v17 = vld [vmem:[%s2590_s9 + $0x30] sm:$0xff]  ;;  %v1061_v36 = vld [vmem:[%s2592_s11 + $0x178] sm:$0xff]  ;;  %v1075_v9 = vld [vmem:[%s2592_s11 + $0x1e8] sm:$0xff] }
 0x1b2   :  { %963 = vmatpush.msrb.mxu2 %v735_v39  ;;  %986 = vmatpush.msrb.mxu3 %v799_v40  ;;  %v1077_v39 = vld [vmem:[%s2592_s11 + $0x1f8] sm:$0xff]  ;;  %v1060_v40 = vld [vmem:[%s2592_s11 + $0x170] sm:$0xff]  ;;  %v1015_v10 = vld [vmem:[%s2592_s11 + $0x8] sm:$0xff] }
 0x1b3   :  { %595 = vst [vmem:[#allocation2 + $0x8] sm:$0xff] %v593_v20  ;;  %653 = vmatmul.f32.gmra.mxu2 %v593_v20  ;;  %676 = vmatmul.f32.gmra.mxu3 %v593_v20  ;;  %v755_v20 = vld [vmem:[%s2590_s9 + $0x238] sm:$0xff]  ;;  %v1016_v6 = vld [vmem:[%s2592_s11 + $0x10] sm:$0xff] }
 0x1b4   :  { %964 = vmatpush.msrb.mxu2 %v731_v43  ;;  %987 = vmatpush.msrb.mxu3 %v795_v44  ;;  %v1027_v43 = vld [vmem:[%s2592_s11 + $0x68] sm:$0xff] }
 0x1b5   :  { %927 = vmatpush.msrb.mxu0 %v694_v13  ;;  %950 = vmatpush.msrb.mxu1 %v758_v14  ;;  %v1043_v44 = vld [vmem:[%s2592_s11 + $0xe8] sm:$0xff]  ;;  %v1074_v13 = vld [vmem:[%s2592_s11 + $0x1e0] sm:$0xff] }
 0x1b6   :  { %965 = vmatpush.msrb.mxu2 %v727_v47  ;;  %988 = vmatpush.msrb.mxu3 %v791_v48  ;;  %v1059_v47 = vld [vmem:[%s2592_s11 + $0x168] sm:$0xff]  ;;  %v1014_v14 = vld [vmem:[%s2592_s11] sm:$0xff] }
 0x1b7   :  { %928 = vmatpush.msrb.mxu0 %v690_v17  ;;  %951 = vmatpush.msrb.mxu1 %v754_v18  ;;  %v1073_v17 = vld [vmem:[%s2592_s11 + $0x1d8] sm:$0xff]  ;;  %v1032_v18 = vld [vmem:[%s2592_s11 + $0x90] sm:$0xff] }
 0x1b8   :  { %966 = vmatpush.msrb.mxu2 %v723_v51  ;;  %989 = vmatpush.msrb.mxu3 %v787_v52  ;;  %v1042_v51 = vld [vmem:[%s2592_s11 + $0xe0] sm:$0xff] }
 0x1b9   :  { %929 = vmatpush.msrb.mxu0 %v686_v21  ;;  %952 = vmatpush.msrb.mxu1 %v750_v22  ;;  %v1058_v52 = vld [vmem:[%s2592_s11 + $0x160] sm:$0xff]  ;;  %v1031_v21 = vld [vmem:[%s2592_s11 + $0x88] sm:$0xff]  ;;  %v1052_v22 = vld [vmem:[%s2592_s11 + $0x130] sm:$0xff] }
 0x1ba   :  { %967 = vmatpush.msrb.mxu2 %v719_v55  ;;  %990 = vmatpush.msrb.mxu3 %v783_v56  ;;  %v1024_v55 = vld [vmem:[%s2592_s11 + $0x50] sm:$0xff] }
 0x1bb   :  { %v1040_v56 = vld [vmem:[%s2592_s11 + $0xd0] sm:$0xff] }
 0x1bc   :  { %968 = vmatpush.msrb.mxu2 %v715_v59  ;;  %991 = vmatpush.msrb.mxu3 %v779_v60  ;;  %v1022_v59 = vld [vmem:[%s2592_s11 + $0x40] sm:$0xff] }
 0x1bd   :  { %v1038_v60 = vld [vmem:[%s2592_s11 + $0xc0] sm:$0xff] }
 0x1be   :  { %969 = vmatpush.msrb.mxu2 %v711_v63  ;;  %992 = vmatpush.msrb.mxu3 %v775_v0  ;;  %v1020_v63 = vld [vmem:[%s2592_s11 + $0x30] sm:$0xff]  ;;  %v1019_v0 = vld [vmem:[%s2592_s11 + $0x28] sm:$0xff] }
 0x1c0   :  { %970 = vmatpush.msrb.mxu2 %v707_v3  ;;  %993 = vmatpush.msrb.mxu3 %v771_v4  ;;  %v1036_v3 = vld [vmem:[%s2592_s11 + $0xb0] sm:$0xff]  ;;  %v1057_v4 = vld [vmem:[%s2592_s11 + $0x158] sm:$0xff] }
 0x1c2   :  { %971 = vmatpush.msrb.mxu2 %v703_v7  ;;  %994 = vmatpush.msrb.mxu3 %v767_v8  ;;  %v1035_v7 = vld [vmem:[%s2592_s11 + $0xa8] sm:$0xff]  ;;  %v1056_v8 = vld [vmem:[%s2592_s11 + $0x150] sm:$0xff] }
 0x1c4   :  { %972 = vmatpush.msrb.mxu2 %v699_v11  ;;  %995 = vmatpush.msrb.mxu3 %v763_v12  ;;  %v1034_v11 = vld [vmem:[%s2592_s11 + $0xa0] sm:$0xff]  ;;  %v1055_v12 = vld [vmem:[%s2592_s11 + $0x148] sm:$0xff] }
 0x1c6   :  { %973 = vmatpush.msrb.mxu2 %v695_v15  ;;  %996 = vmatpush.msrb.mxu3 %v759_v16  ;;  %v1033_v15 = vld [vmem:[%s2592_s11 + $0x98] sm:$0xff]  ;;  %v1054_v16 = vld [vmem:[%s2592_s11 + $0x140] sm:$0xff] }
 0x1c8   :  { %974 = vmatpush.msrb.mxu2 %v691_v19  ;;  %997 = vmatpush.msrb.mxu3 %v755_v20  ;;  %v1053_v19 = vld [vmem:[%s2592_s11 + $0x138] sm:$0xff]  ;;  %v1072_v20 = vld [vmem:[%s2592_s11 + $0x1d0] sm:$0xff] }
 0x1ca   :  { %975 = vmatpush.msrb.mxu2 %v687_v23  ;;  %998 = vmatpush.msrb.mxu3 %v751_v24  ;;  %v1071_v23 = vld [vmem:[%s2592_s11 + $0x1c8] sm:$0xff]  ;;  %v1030_v24 = vld [vmem:[%s2592_s11 + $0x80] sm:$0xff] }
 0x22e   :  { %v651_v28 = vpop.f32.mrf.mxu2  ;;  %v674_v29 = vpop.f32.mrf.mxu3 }
 0x22f   :  { %v652_v30 = vadd.f32 %v651_v28, %v630_v26  ;;  %v675_v31 = vadd.f32 %v674_v29, %v631_v27  ;;  %v1069_v28 = vld [vmem:[%s2592_s11 + $0x1b8] sm:$0xff] }
 0x230   :  { %v1049_v29 = vld [vmem:[%s2592_s11 + $0x118] sm:$0xff] }
 0x231   :  { %v680_v32 = vmax.f32 %v652_v30, 0.0  ;;  %v681_v33 = vmax.f32 %v675_v31, 0.0  ;;  %v1068_v30 = vld [vmem:[%s2592_s11 + $0x1b0] sm:$0xff] }
 0x232   :  { %v1048_v31 = vld [vmem:[%s2592_s11 + $0x110] sm:$0xff] }
 0x233   :  { %838 = vmatmul.f32.vlgmr.msra.gmra.mxu0 %v680_v32  ;;  %861 = vmatmul.f32.vlgmr.msra.gmra.mxu1 %v681_v33 }
 0x234   :  { %884 = vmatmul.f32.vlgmr.msra.gmra.mxu2 %v680_v32  ;;  %907 = vmatmul.f32.vlgmr.msra.gmra.mxu3 %v681_v33 }
 0x235   :  { %1082 = vmatpush.msra.mxu0 %v1029_v34  ;;  %1105 = vmatpush.msra.mxu1 %v1045_v35  ;;  %v1066_v34 = vld [vmem:[%s2592_s11 + $0x1a0] sm:$0xff] }
 0x236   :  { %v654_v41 = vpop.f32.mrf.mxu2  ;;  %v677_v42 = vpop.f32.mrf.mxu3  ;;  %1128 = vmatpush.msra.mxu2 %v1061_v36  ;;  %1151 = vmatpush.msra.mxu3 %v1077_v39  ;;  %v1046_v35 = vld [vmem:[%s2592_s11 + $0x100] sm:$0xff]  ;;  %v1065_v36 = vld [vmem:[%s2592_s11 + $0x198] sm:$0xff]  ;;  %v1063_v39 = vld [vmem:[%s2592_s11 + $0x188] sm:$0xff] }
 0x237   :  { %v655_v45 = vadd.f32 %v654_v41, %v630_v26  ;;  %v678_v46 = vadd.f32 %v677_v42, %v631_v27  ;;  %1083 = vmatpush.msra.mxu0 %v1028_v37  ;;  %1106 = vmatpush.msra.mxu1 %v1044_v38  ;;  %v1070_v26 = vld [vmem:[%s2592_s11 + $0x1c0] sm:$0xff]  ;;  %v1064_v37 = vld [vmem:[%s2592_s11 + $0x190] sm:$0xff] }
 0x238   :  { %1129 = vmatpush.msra.mxu2 %v1060_v40  ;;  %1152 = vmatpush.msra.mxu3 %v1076_v5  ;;  %v1050_v27 = vld [vmem:[%s2592_s11 + $0x120] sm:$0xff] }
 0x239   :  { %v682_v48 = vmax.f32 %v655_v45, 0.0  ;;  %v683_v49 = vmax.f32 %v678_v46, 0.0  ;;  %1084 = vmatpush.msra.mxu0 %v1027_v43  ;;  %1107 = vmatpush.msra.mxu1 %v1043_v44  ;;  %v812_v38 = vld [vmem:[%s2591_s10] sm:$0xf]  ;;  %s1282_s10 = smov [#allocation2]  }
 0x23a   :  { %1130 = vmatpush.msra.mxu2 %v1059_v47  ;;  %1153 = vmatpush.msra.mxu3 %v1075_v9  ;;  %v1062_v40 = vld [vmem:[%s2592_s11 + $0x180] sm:$0xff]  ;;  %v814_v41 = vperm.slane %v812_v38, 0  ;;  %v815_v46 = vperm.slane %v812_v38, 1 }
 0x23b   :  { %841 = vmatmul.f32.gmra.mxu0 %v682_v48  ;;  %864 = vmatmul.f32.gmra.mxu1 %v683_v49 }
 0x23c   :  { %887 = vmatmul.f32.gmra.mxu2 %v682_v48  ;;  %910 = vmatmul.f32.gmra.mxu3 %v683_v49 }
 0x23d   :  { %1085 = vmatpush.msra.mxu0 %v1026_v50  ;;  %1108 = vmatpush.msra.mxu1 %v1042_v51 }
 0x23e   :  { %1131 = vmatpush.msra.mxu2 %v1058_v52  ;;  %1154 = vmatpush.msra.mxu3 %v1074_v13 }
 0x23f   :  { %1086 = vmatpush.msra.mxu0 %v1025_v53  ;;  %1109 = vmatpush.msra.mxu1 %v1041_v54 }
 0x240   :  { %1132 = vmatpush.msra.mxu2 %v1057_v4  ;;  %1155 = vmatpush.msra.mxu3 %v1073_v17  ;;  %v817_v4 = vperm.slane %v812_v38, 3 }
 0x241   :  { %1087 = vmatpush.msra.mxu0 %v1024_v55  ;;  %1110 = vmatpush.msra.mxu1 %v1040_v56 }
 0x242   :  { %1133 = vmatpush.msra.mxu2 %v1056_v8  ;;  %1156 = vmatpush.msra.mxu3 %v1072_v20 }
 0x243   :  { %930 = vmatmul.f32.vlgmr.msrb.gmra.mxu0 %v680_v32  ;;  %953 = vmatmul.f32.vlgmr.msrb.gmra.mxu1 %v681_v33 }
 0x244   :  { %976 = vmatmul.f32.vlgmr.msrb.gmra.mxu2 %v680_v32  ;;  %999 = vmatmul.f32.vlgmr.msrb.gmra.mxu3 %v681_v33  ;;  %v1067_v32 = vld [vmem:[%s2592_s11 + $0x1a8] sm:$0xff] }
 0x245   :  { %1088 = vmatpush.msra.mxu0 %v1023_v57  ;;  %1111 = vmatpush.msra.mxu1 %v1039_v58  ;;  %v1047_v33 = vld [vmem:[%s2592_s11 + $0x108] sm:$0xff]  ;;  %v816_v58 = vperm.slane %v812_v38, 2  ;;  %s1180_s11 = sshll.u32 %s1282_s10, 4  ;;  %s1181_s11 = int_to_ptr.vmem [resolvable:$true] %s1180_s11 }
 0x246   :  { %1134 = vmatpush.msra.mxu2 %v1055_v12  ;;  %1157 = vmatpush.msra.mxu3 %v1071_v23  ;;  %1188 = dma.vmem_to_hbm [thread:$0]  %s1181_s11, 256, %s1183_s25, [#allocation3], %s1283_s26, %s1283_s26, %s1284_s27  }
 0x247   :  { %1089 = vmatpush.msra.mxu0 %v1022_v59  ;;  %1112 = vmatpush.msra.mxu1 %v1038_v60 }
 0x248   :  { %1135 = vmatpush.msra.mxu2 %v1054_v16  ;;  %1158 = vmatpush.msra.mxu3 %v1070_v26 }
 0x249   :  { %1090 = vmatpush.msra.mxu0 %v1021_v61  ;;  %1113 = vmatpush.msra.mxu1 %v1037_v62 }
 0x24a   :  { %1136 = vmatpush.msra.mxu2 %v1053_v19  ;;  %1159 = vmatpush.msra.mxu3 %v1069_v28 }
 0x24b   :  { %933 = vmatmul.f32.gmra.mxu0 %v682_v48  ;;  %956 = vmatmul.f32.gmra.mxu1 %v683_v49 }
 0x24c   :  { %979 = vmatmul.f32.gmra.mxu2 %v682_v48  ;;  %1002 = vmatmul.f32.gmra.mxu3 %v683_v49 }
 0x24d   :  { %1091 = vmatpush.msra.mxu0 %v1020_v63  ;;  %1114 = vmatpush.msra.mxu1 %v1036_v3 }
 0x24e   :  { %1137 = vmatpush.msra.mxu2 %v1052_v22  ;;  %1160 = vmatpush.msra.mxu3 %v1068_v30  ;;  %v1229_v22 = vld [vmem:[%s2593_s12] ss:$0 sm:$0xff] }
 0x24f   :  { %1092 = vmatpush.msra.mxu0 %v1019_v0  ;;  %1115 = vmatpush.msra.mxu1 %v1035_v7 }
 0x250   :  { %1138 = vmatpush.msra.mxu2 %v1051_v25  ;;  %1161 = vmatpush.msra.mxu3 %v1067_v32 }
 0x251   :  { %1093 = vmatpush.msra.mxu0 %v1018_v1  ;;  %1116 = vmatpush.msra.mxu1 %v1034_v11 }
 0x252   :  { %1139 = vmatpush.msra.mxu2 %v1050_v27  ;;  %1162 = vmatpush.msra.mxu3 %v1066_v34 }
 0x253   :  { %1094 = vmatpush.msra.mxu0 %v1017_v2  ;;  %1117 = vmatpush.msra.mxu1 %v1033_v15 }
 0x254   :  { %1140 = vmatpush.msra.mxu2 %v1049_v29  ;;  %1163 = vmatpush.msra.mxu3 %v1065_v36 }
 0x255   :  { %1095 = vmatpush.msra.mxu0 %v1016_v6  ;;  %1118 = vmatpush.msra.mxu1 %v1032_v18 }
 0x256   :  { %1141 = vmatpush.msra.mxu2 %v1048_v31  ;;  %1164 = vmatpush.msra.mxu3 %v1064_v37 }
 0x257   :  { %1096 = vmatpush.msra.mxu0 %v1015_v10  ;;  %1119 = vmatpush.msra.mxu1 %v1031_v21 }
 0x258   :  { %1142 = vmatpush.msra.mxu2 %v1047_v33  ;;  %1165 = vmatpush.msra.mxu3 %v1063_v39 }
 0x259   :  { %1097 = vmatpush.msra.mxu0 %v1014_v14  ;;  %1120 = vmatpush.msra.mxu1 %v1030_v24 }
 0x25a   :  { %1143 = vmatpush.msra.mxu2 %v1046_v35  ;;  %1166 = vmatpush.msra.mxu3 %v1062_v40 }
 0x2b0   :  { %v839_v42 = vpop.f32.mrf.mxu0  ;;  %v862_v43 = vpop.f32.mrf.mxu1 }
 0x2b1   :  { %v840_v44 = vadd.f32 %v839_v42, %v814_v41 }
 0x2b3   :  { %v863_v45 = vadd.f32 %v862_v43, %v840_v44 }
 0x2b5   :  { %v1006_v47 = vmax.f32 %v863_v45, 0.0 }
 0x2b7   :  { %v885_v48 = vpop.f32.mrf.mxu2  ;;  %v908_v49 = vpop.f32.mrf.mxu3  ;;  %1098 = vmatmul.f32.vlgmr.msra.gmra.mxu0 %v1006_v47 }
 0x2b8   :  { %v886_v50 = vadd.f32 %v885_v48, %v815_v46  ;;  %v842_v51 = vpop.f32.mrf.mxu0  ;;  %v865_v52 = vpop.f32.mrf.mxu1 }
 0x2b9   :  { %v843_v53 = vadd.f32 %v842_v51, %v814_v41 }
 0x2ba   :  { %v909_v54 = vadd.f32 %v908_v49, %v886_v50 }
 0x2bb   :  { %v866_v55 = vadd.f32 %v865_v52, %v843_v53 }
 0x2bc   :  { %v1007_v56 = vmax.f32 %v909_v54, 0.0 }
 0x2bd   :  { %v1010_v57 = vmax.f32 %v866_v55, 0.0 }
 0x2be   :  { %1121 = vmatmul.f32.vlgmr.msra.gmra.mxu1 %v1007_v56 }
 0x2bf   :  { %v888_v59 = vpop.f32.mrf.mxu2  ;;  %v911_v60 = vpop.f32.mrf.mxu3  ;;  %1101 = vmatmul.f32.gmra.mxu0 %v1010_v57 }
 0x2c0   :  { %v889_v61 = vadd.f32 %v888_v59, %v815_v46  ;;  %v931_v62 = vpop.f32.mrf.mxu0  ;;  %v954_v63 = vpop.f32.mrf.mxu1 }
 0x2c1   :  { %v932_v0 = vadd.f32 %v931_v62, %v816_v58 }
 0x2c2   :  { %v912_v1 = vadd.f32 %v911_v60, %v889_v61 }
 0x2c3   :  { %v955_v2 = vadd.f32 %v954_v63, %v932_v0 }
 0x2c4   :  { %v1011_v3 = vmax.f32 %v912_v1, 0.0 }
 0x2c5   :  { %v1008_v5 = vmax.f32 %v955_v2, 0.0 }
 0x2c6   :  { %1124 = vmatmul.f32.gmra.mxu1 %v1011_v3 }
 0x2c7   :  { %v977_v6 = vpop.f32.mrf.mxu2  ;;  %v1000_v7 = vpop.f32.mrf.mxu3  ;;  %1144 = vmatmul.f32.vlgmr.msra.gmra.mxu2 %v1008_v5 }
 0x2c8   :  { %v978_v8 = vadd.f32 %v977_v6, %v817_v4  ;;  %v934_v9 = vpop.f32.mrf.mxu0  ;;  %v957_v12 = vpop.f32.mrf.mxu1 }
 0x2c9   :  { %v935_v10 = vadd.f32 %v934_v9, %v816_v58 }
 0x2ca   :  { %v1001_v11 = vadd.f32 %v1000_v7, %v978_v8 }
 0x2cb   :  { %v958_v13 = vadd.f32 %v957_v12, %v935_v10 }
 0x2cc   :  { %v1009_v14 = vmax.f32 %v1001_v11, 0.0 }
 0x2cd   :  { %v1012_v15 = vmax.f32 %v958_v13, 0.0 }
 0x2ce   :  { %1167 = vmatmul.f32.vlgmr.msra.gmra.mxu3 %v1009_v14 }
 0x2cf   :  { %v980_v16 = vpop.f32.mrf.mxu2  ;;  %1147 = vmatmul.f32.gmra.mxu2 %v1012_v15  ;;  %v1003_v18 = vpop.f32.mrf.mxu3 }
 0x2d0   :  { %v981_v17 = vadd.f32 %v980_v16, %v817_v4 }
 0x2d2   :  { %v1004_v19 = vadd.f32 %v1003_v18, %v981_v17 }
 0x2d4   :  { %v1013_v20 = vmax.f32 %v1004_v19, 0.0 }
 0x2d6   :  { %1170 = vmatmul.f32.gmra.mxu3 %v1013_v20 }
 0x334   :  { %v1099_v21 = vpop.f32.mrf.mxu0 }
 0x335   :  { %v1100_v25 = vadd.f32 %v1229_v22, %v1099_v21 }
 0x33b   :  { %v1122_v23 = vpop.f32.mrf.mxu1 }
 0x33c   :  { %v1123_v26 = vadd.f32 %v1122_v23, %v1100_v25  ;;  %v1102_v28 = vpop.f32.mrf.mxu0 }
 0x33d   :  { %v1103_v32 = vadd.f32 %v1229_v22, %v1102_v28 }
 0x343   :  { %v1125_v31 = vpop.f32.mrf.mxu1 }
 0x344   :  { %v1126_v34 = vadd.f32 %v1125_v31, %v1103_v32 }
 0x34a   :  { %v1145_v24 = vpop.f32.mrf.mxu2 }
 0x34b   :  { %v1146_v27 = vadd.f32 %v1145_v24, %v1123_v26 }
 0x351   :  { %v1168_v29 = vpop.f32.mrf.mxu3 }
 0x352   :  { %v1169_v30 = vadd.f32 %v1168_v29, %v1146_v27  ;;  %v1148_v33 = vpop.f32.mrf.mxu2 }
 0x353   :  { %v1149_v35 = vadd.f32 %v1148_v33, %v1126_v34 }
 0x354   :  { %1174 = vst [vmem:[#allocation4] sm:$0xff] %v1169_v30 }
 0x359   :  { %v1171_v36 = vpop.f32.mrf.mxu3 }
 0x35a   :  { %v1172_v37 = vadd.f32 %v1171_v36, %v1149_v35 }
 0x35c   :  { %1175 = vst [vmem:[#allocation4 + $0x8] sm:$0xff] %v1172_v37 }
 0x35d   :  { %1201 = dma.vmem_to_hbm [thread:$0]  %s1194_s4, 256, %s1196_s29, [#allocation5], %s1283_s26, %s1283_s26, %s1284_s27  }
 0x35e   :  { %1278 = dma.done.wait [#allocation3], 256  }
 0x35f   :  { %1279 = vsyncadd [#allocation3], 4294967040 }
 0x360   :  { %1280 = dma.done.wait [#allocation5], 256  }
 0x361   :  { %1281 = vsyncadd [#allocation5], 4294967040 }
 0x362   :  { %1210 = vsyncpa [#allocation3], 1 }
 0x363   :  { %1211 = vsyncpa [#allocation5], 1 }

</bundles_post_ra>
